<compile_context>
chip_gen: v7x
topology: tpu7x:2x2x1
jax: 0.10.0
libtpu: 0.0.40
codegen_flags: <defaults>
</compile_context>

<pallas_src>
import functools

import jax
import jax.numpy as jnp
from jax import lax
from jax.experimental import pallas as pl
from jax.experimental.pallas import tpu as pltpu

LANE = 128


def _round_up(x, m):
    return (x + m - 1) // m * m


def _pick_tile_h(H, W):
    """Largest power-of-two divisor row tile with >=256 output rows per matmul."""
    # 256 rows fills the v6e/v7x 256-wide MXU; on v5e (128-wide) it simply means
    # two passes per matmul, which is still fine and amortizes step overhead.
    th = H
    while th % 2 == 0 and (th // 2) * W >= 256:
        th //= 2
    return th


def _vmem_limit_bytes(H, W, TH, cin_p, cout_p, padded_out):
    """Rough double-buffered VMEM budget for one conv call (clamped to [32,64] MiB)."""
    wsub_in = _round_up(W + 2, 8)
    in_img = (H + 2) * wsub_in * cin_p * 2                 # bf16 resident input
    wts = 9 * cin_p * cout_p * 2                           # bf16 weights
    if padded_out:
        out_y = (H + 2) * wsub_in * cout_p * 2             # bf16 resident padded out
    else:
        out_y = TH * _round_up(W, 8) * cout_p * 2
    sums = 8 * cout_p * 4
    # transient compute buffers: f32 slab, one bf16 tap, f32 accumulator
    tmp = (TH + 2) * wsub_in * cin_p * 4 + TH * W * cin_p * 2 + TH * W * cout_p * 4
    est = 2 * (in_img + wts + out_y + sums) + 2 * tmp + (4 << 20)
    return int(min(max(est, 32 << 20), 64 << 20))


# ----------------------------- Pallas kernels ------------------------------

def _conv3x3_kernel(*refs, TH, H, W, cin_p, cout_p, fuse_input_act, padded_out):
    """3x3 conv (stride 1) on one output row tile, 9 accumulating MXU matmuls.

    refs (fuse_input_act=True):  x_ref, inact_ref, w_ref, o_ref, sums_ref
    refs (fuse_input_act=False): x_ref,            w_ref, o_ref, sums_ref

    x_ref   : (1, H+2, W+2, cin_p)  spatially padded bf16 input (resident across t)
    inact_ref: (2, cin_p)           [scale; bias] of bn1, applied (+ReLU) to input
    w_ref   : (9, cin_p, cout_p)    bf16 weights indexed by kh*3+kw
    o_ref   : padded_out -> (1, H+2, W+2, cout_p) resident padded bf16 output
              else       -> (1, TH, W, cout_p)    row-tiled bf16 output
    sums_ref: (1, 1, 2, cout_p)     per-tile [sum; sum-of-squares] of conv output
    """
    if fuse_input_act:
        x_ref, inact_ref, w_ref, o_ref, sums_ref = refs
    else:
        x_ref, w_ref, o_ref, sums_ref = refs

    t = pl.program_id(1)
    r0 = pl.multiple_of(t * TH, TH)

    # (TH+2, W+2, cin_p) slab in padded coordinates (bf16).
    slab = x_ref[0, pl.ds(r0, TH + 2), :, :]

    if fuse_input_act:
        # relu(bn1(.)) fused onto conv2's input tile in VMEM.  The zero halo of the
        # padded slab must stay exactly zero, so only the BN bias is masked to the
        # interior: border gives relu(0*scale + 0) == 0.
        sc = inact_ref[0:1, :].reshape(1, 1, cin_p)
        bc = inact_ref[1:2, :].reshape(1, 1, cin_p)
        rows = lax.broadcasted_iota(jnp.int32, (TH + 2, 1), 0) + r0
        cols = lax.broadcasted_iota(jnp.int32, (1, W + 2), 1)
        interior = ((rows >= 1) & (rows <= H) & (cols >= 1) & (cols <= W))[:, :, None]
        slab = jnp.maximum(slab.astype(jnp.float32) * sc
                           + jnp.where(interior, bc, 0.0),
                           0.0).astype(jnp.bfloat16)

    # 3x3 conv as 9 accumulating (TH*W, cin_p) @ (cin_p, cout_p) MXU matmuls from
    # shifted slab views — no im2col patches buffer, no lane concat.
    acc = None
    for kh in range(3):
        for kw in range(3):
            tap = slab[kh:kh + TH, kw:kw + W, :].reshape(TH * W, cin_p)
            d = jnp.dot(tap, w_ref[kh * 3 + kw], preferred_element_type=jnp.float32)
            acc = d if acc is None else acc + d

    # Per-channel partial statistics of the pre-BN conv output (for batch-norm).
    psum = jnp.sum(acc, axis=0, keepdims=True)
    psumsq = jnp.sum(acc * acc, axis=0, keepdims=True)
    sums_ref[...] = jnp.concatenate([psum, psumsq], axis=0)[None, None, :, :]

    tile = acc.reshape(TH, W, cout_p).astype(o_ref.dtype)
    if padded_out:
        # y1 carries its own spatial halo so conv2 needs no jnp.pad pass.  Only the
        # top/bottom halo rows need a one-time zero-init; tile rows are stored at
        # full width (zero halo columns concatenated in) -> sublane-aligned stores.
        @pl.when(t == 0)
        def _zero_halo_rows():
            zrow = jnp.zeros((W + 2, cout_p), o_ref.dtype)
            o_ref[0, 0] = zrow
            o_ref[0, H + 1] = zrow

        zcol = jnp.zeros((TH, 1, cout_p), o_ref.dtype)
        o_ref[0, pl.ds(r0 + 1, TH), :, :] = jnp.concatenate([zcol, tile, zcol], axis=1)
    else:
        o_ref[...] = tile[None]


def _affine_relu_kernel(x_ref, inact_ref, o_ref):
    """relu(x * scale + bias), per-channel scale/bias.  Lane-dense channel dim."""
    c = x_ref.shape[3]
    sc = inact_ref[0:1, :].reshape(1, 1, 1, c)
    bc = inact_ref[1:2, :].reshape(1, 1, 1, c)
    o_ref[...] = jnp.maximum(x_ref[...].astype(jnp.float32) * sc + bc,
                             0.0).astype(o_ref.dtype)


# ------------------------------ JAX wrappers --------------------------------

def _conv3x3(x_p, w9, inact, cout_p, *, TH, H, W, fuse_input_act, padded_out):
    """x_p: (N, H+2, W+2, cin_p) spatially padded bf16 NHWC input.  Returns (y, sums)."""
    N, cin_p = x_p.shape[0], x_p.shape[3]
    T = H // TH

    kernel = functools.partial(
        _conv3x3_kernel, TH=TH, H=H, W=W, cin_p=cin_p, cout_p=cout_p,
        fuse_input_act=fuse_input_act, padded_out=padded_out)

    if padded_out:
        out_y_shape = (N, H + 2, W + 2, cout_p)
        out_y_spec = pl.BlockSpec((1, H + 2, W + 2, cout_p), lambda n, t: (n, 0, 0, 0))
        # Row-tile axis revisits the resident padded output -> must be "arbitrary".
        # TODO(synk): per-tile halo-carrying output blocks would allow "parallel".
        sems = ("parallel", "arbitrary")
    else:
        out_y_shape = (N, H, W, cout_p)
        out_y_spec = pl.BlockSpec((1, TH, W, cout_p), lambda n, t: (n, t, 0, 0))
        sems = ("parallel", "parallel")

    # Input image is resident across the row-tile axis (same block index for all t);
    # weights / scale+bias blocks are grid-invariant.
    in_specs = [pl.BlockSpec((1, H + 2, W + 2, cin_p), lambda n, t: (n, 0, 0, 0))]
    inputs = [x_p]
    if fuse_input_act:
        in_specs.append(pl.BlockSpec((2, cin_p), lambda n, t: (0, 0)))
        inputs.append(inact)
    in_specs.append(pl.BlockSpec((9, cin_p, cout_p), lambda n, t: (0, 0, 0)))
    inputs.append(w9)

    y, sums = pl.pallas_call(
        kernel,
        out_shape=(jax.ShapeDtypeStruct(out_y_shape, jnp.bfloat16),
                   jax.ShapeDtypeStruct((N, T, 2, cout_p), jnp.float32)),
        grid_spec=pltpu.PrefetchScalarGridSpec(
            num_scalar_prefetch=0,
            grid=(N, T),
            in_specs=in_specs,
            out_specs=(out_y_spec,
                       pl.BlockSpec((1, 1, 2, cout_p), lambda n, t: (n, t, 0, 0))),
        ),
        compiler_params=pltpu.CompilerParams(
            dimension_semantics=sems,
            vmem_limit_bytes=_vmem_limit_bytes(H, W, TH, cin_p, cout_p, padded_out)),
    )(*inputs)
    return y, sums


def _affine_relu(y, inact, *, TH):
    N, H, W, C = y.shape
    T = H // TH
    return pl.pallas_call(
        _affine_relu_kernel,
        out_shape=jax.ShapeDtypeStruct((N, H, W, C), jnp.float32),
        grid_spec=pltpu.PrefetchScalarGridSpec(
            num_scalar_prefetch=0,
            grid=(N, T),
            in_specs=[pl.BlockSpec((1, TH, W, C), lambda n, t: (n, t, 0, 0)),
                      pl.BlockSpec((2, C), lambda n, t: (0, 0))],
            out_specs=pl.BlockSpec((1, TH, W, C), lambda n, t: (n, t, 0, 0)),
        ),
        compiler_params=pltpu.CompilerParams(
            dimension_semantics=("parallel", "parallel")),
    )(y, inact)


def _bn_fold(sums, gamma_p, beta_p, count, eps=1e-5):
    """Fold train-mode BatchNorm (biased variance) into per-channel scale/bias.

    sums: (N, T, 2, Cp) per-tile [sum, sum_sq] from the conv kernel — tiny reduction.
    Returns (2, Cp) = [scale; bias].  Padded channels have gamma=0 -> scale=bias=0.
    """
    tot = jnp.sum(sums, axis=(0, 1))                       # (2, Cp)
    mean = tot[0] / count
    var = jnp.maximum(tot[1] / count - mean * mean, 0.0)   # biased (train-mode) var
    scale = gamma_p * lax.rsqrt(var + eps)
    bias = beta_p - mean * scale
    return jnp.stack([scale, bias], axis=0).astype(jnp.float32)


class BasicBlockVanilla:
    """Pallas port of the PyTorch BasicBlockVanilla (stride=1, as instantiated here)."""
    expansion = 1

    def __init__(self, in_planes, planes, stride=1, key=None):
        assert stride == 1  # TODO(synk): strided conv (stride>1) not needed here
        if key is None:
            key = jax.random.PRNGKey(0)
        k1, k2, k3, k4 = jax.random.split(key, 4)
        self.in_planes, self.planes = in_planes, planes
        self.cin_p = _round_up(in_planes, LANE)
        self.cp = _round_up(planes, LANE)

        # Conv weights (KH, KW, Cin, Cout), deterministic init, rounded to bf16 for
        # the MXU.  Channel-padded with zeros so padded output channels stay zero.
        w1 = (jax.random.normal(k1, (3, 3, in_planes, planes), jnp.float32)
              * 0.1).astype(jnp.bfloat16)
        w2 = (jax.random.normal(k2, (3, 3, planes, planes), jnp.float32)
              * 0.1).astype(jnp.bfloat16)
        self.w1_hwio, self.w2_hwio = w1, w2   # unpadded copies for the reference
        w1p = jnp.pad(w1, ((0, 0), (0, 0), (0, self.cin_p - in_planes), (0, self.cp - planes)))
        w2p = jnp.pad(w2, ((0, 0), (0, 0), (0, self.cp - planes), (0, self.cp - planes)))
        self.w1 = w1p.reshape(9, self.cin_p, self.cp)   # indexed by kh*3+kw in-kernel
        self.w2 = w2p.reshape(9, self.cp, self.cp)

        # BatchNorm affine params (padded channels get gamma=0 -> stay zero).
        g1 = 1.0 + 0.05 * jax.random.normal(k3, (planes,), jnp.float32)
        g2 = 1.0 + 0.05 * jax.random.normal(k4, (planes,), jnp.float32)
        self.gamma1 = jnp.pad(g1, (0, self.cp - planes))
        self.gamma2 = jnp.pad(g2, (0, self.cp - planes))
        self.beta1 = jnp.zeros((self.cp,), jnp.float32)
        self.beta2 = jnp.zeros((self.cp,), jnp.float32)

    def __call__(self, x_nchw):
        N, C, H, W = x_nchw.shape
        assert C == self.in_planes
        TH = _pick_tile_h(H, W)

        # NCHW -> NHWC in bf16; one jnp.pad does lane (channel) padding and conv1's
        # spatial halo.  (conv2 needs no pad: conv1 emits a padded bf16 output.)
        x = jnp.transpose(x_nchw, (0, 2, 3, 1)).astype(jnp.bfloat16)
        x_p = jnp.pad(x, ((0, 0), (1, 1), (1, 1), (0, self.cin_p - C)))

        # conv1 -> spatially padded pre-BN y1 (bf16) + per-channel partial sums.
        y1_p, sums1 = _conv3x3(x_p, self.w1, None, self.cp, TH=TH, H=H, W=W,
                               fuse_input_act=False, padded_out=True)
        inact1 = _bn_fold(sums1, self.gamma1, self.beta1, N * H * W)

        # conv2 consumes y1 directly: relu(bn1(.)) is applied in-kernel to its input.
        y2, sums2 = _conv3x3(y1_p, self.w2, inact1, self.cp, TH=TH, H=H, W=W,
                             fuse_input_act=True, padded_out=False)
        inact2 = _bn_fold(sums2, self.gamma2, self.beta2, N * H * W)

        # Final relu(bn2(.)) as a lane-dense fused affine kernel (f32 output).
        a2 = _affine_relu(y2, inact2, TH=TH)

        # Drop channel padding, NHWC -> NCHW to match the PyTorch convention.
        return jnp.transpose(a2[..., :self.planes], (0, 3, 1, 2))

    # -------- pure-JAX reference (train-mode BN batch stats), for verification ----
    def reference(self, x_nchw, eps=1e-5):
        x = x_nchw.astype(jnp.bfloat16).astype(jnp.float32)  # match kernel's bf16 input

        def conv(v, w_hwio):
            return lax.conv_general_dilated(
                v, w_hwio.astype(jnp.float32), (1, 1), 'SAME',
                dimension_numbers=('NCHW', 'HWIO', 'NCHW'))

        def bn_relu(v, gamma, beta):
            mean = jnp.mean(v, axis=(0, 2, 3), keepdims=True)
            var = jnp.var(v, axis=(0, 2, 3), keepdims=True)
            g = gamma.reshape(1, -1, 1, 1)
            b = beta.reshape(1, -1, 1, 1)
            return jnp.maximum((v - mean) * lax.rsqrt(var + eps) * g + b, 0.0)

        y1 = conv(x, self.w1_hwio)
        a1 = bn_relu(y1, self.gamma1[:self.planes], self.beta1[:self.planes])
        y2 = conv(a1, self.w2_hwio)
        return bn_relu(y2, self.gamma2[:self.planes], self.beta2[:self.planes])


if __name__ == "__main__":
    key = jax.random.PRNGKey(0)
    kx, kp = jax.random.split(key)

    N, C, H, W = 2, 4, 16, 16          # NCHW, matching the PyTorch module's input
    x = jax.random.normal(kx, (N, C, H, W), jnp.float32)

    block = BasicBlockVanilla(in_planes=C, planes=C, stride=1, key=kp)
    out = jax.block_until_ready(block(x))

    assert out.shape == (N, C, H, W)
    assert bool(jnp.all(out >= 0.0))   # final ReLU
    assert bool(jnp.all(jnp.isfinite(out)))

    # Tolerance check against a pure-JAX reference (bf16 intermediates -> loose atol).
    ref = jax.block_until_ready(block.reference(x))
    err = float(jnp.max(jnp.abs(out - ref)))
    assert err < 5e-2, f"max abs err vs pure-JAX reference: {err}"
    print("KERNEL_OK")
</pallas_src>

<mosaic_0001>
module attributes {stable_mosaic.version = 11 : i64} {
  func.func @_conv3x3_kernel(%arg0: i32, %arg1: i32, %arg2: memref<1x18x18x128xbf16, #tpu.memory_space<vmem>>, %arg3: memref<9x128x128xbf16, #tpu.memory_space<vmem>>, %arg4: memref<1x18x18x128xbf16, #tpu.memory_space<vmem>>, %arg5: memref<1x1x2x128xf32, #tpu.memory_space<vmem>>) attributes {dimension_semantics = [#tpu.dimension_semantics<parallel>, #tpu.dimension_semantics<arbitrary>], iteration_bounds = array<i64: 2, 1>, scalar_prefetch = 0 : i64, scratch_operands = 0 : i64, tpu.core_type = #tpu.core_type<tc>, window_params = [{transform_indices = @transform_0, window_bounds = array<i64: 1, 18, 18, 128>}, {pipeline_mode = #tpu.pipeline_mode<synchronous>, transform_indices = @transform_1, window_bounds = array<i64: 9, 128, 128>}, {transform_indices = @transform_2, window_bounds = array<i64: 1, 18, 18, 128>}, {transform_indices = @transform_3, window_bounds = array<i64: 1, 1, 2, 128>}]} {
    %c16_i32 = arith.constant 16 : i32
    %0 = arith.muli %arg1, %c16_i32 : i32
    %1 = tpu.assume_multiple %0, 16 : i32
    %c0 = arith.constant 0 : index
    %2 = arith.index_cast %1 : i32 to index
    %c0_0 = arith.constant 0 : index
    %c0_1 = arith.constant 0 : index
    %3 = vector.load %arg2[%c0, %2, %c0_0, %c0_1] : memref<1x18x18x128xbf16, #tpu.memory_space<vmem>>, vector<1x18x18x128xbf16>
    %4 = vector.shape_cast %3 : vector<1x18x18x128xbf16> to vector<18x18x128xbf16>
    %5 = vector.extract_strided_slice %4 {offsets = [0, 0, 0], sizes = [16, 16, 128], strides = [1, 1, 1]} : vector<18x18x128xbf16> to vector<16x16x128xbf16>
    %6 = vector.shape_cast %5 : vector<16x16x128xbf16> to vector<256x128xbf16>
    %c0_2 = arith.constant 0 : index
    %c0_3 = arith.constant 0 : index
    %c0_4 = arith.constant 0 : index
    %7 = vector.load %arg3[%c0_2, %c0_3, %c0_4] : memref<9x128x128xbf16, #tpu.memory_space<vmem>>, vector<1x128x128xbf16>
    %8 = vector.shape_cast %7 : vector<1x128x128xbf16> to vector<128x128xbf16>
    %cst = arith.constant dense<0.000000e+00> : vector<256x128xf32>
    %9 = tpu.matmul %6, %8, %cst {dimension_numbers = #tpu.dot_dimension_numbers<[1], [0], [0], [1], [0, 0, 1, 1], [], []>} : vector<256x128xbf16>, vector<128x128xbf16>, vector<256x128xf32> -> vector<256x128xf32>
    %10 = vector.extract_strided_slice %4 {offsets = [0, 1, 0], sizes = [16, 16, 128], strides = [1, 1, 1]} : vector<18x18x128xbf16> to vector<16x16x128xbf16>
    %11 = vector.shape_cast %10 : vector<16x16x128xbf16> to vector<256x128xbf16>
    %c1 = arith.constant 1 : index
    %c0_5 = arith.constant 0 : index
    %c0_6 = arith.constant 0 : index
    %12 = vector.load %arg3[%c1, %c0_5, %c0_6] : memref<9x128x128xbf16, #tpu.memory_space<vmem>>, vector<1x128x128xbf16>
    %13 = vector.shape_cast %12 : vector<1x128x128xbf16> to vector<128x128xbf16>
    %cst_7 = arith.constant dense<0.000000e+00> : vector<256x128xf32>
    %14 = tpu.matmul %11, %13, %cst_7 {dimension_numbers = #tpu.dot_dimension_numbers<[1], [0], [0], [1], [0, 0, 1, 1], [], []>} : vector<256x128xbf16>, vector<128x128xbf16>, vector<256x128xf32> -> vector<256x128xf32>
    %15 = arith.addf %9, %14 : vector<256x128xf32>
    %16 = vector.extract_strided_slice %4 {offsets = [0, 2, 0], sizes = [16, 16, 128], strides = [1, 1, 1]} : vector<18x18x128xbf16> to vector<16x16x128xbf16>
    %17 = vector.shape_cast %16 : vector<16x16x128xbf16> to vector<256x128xbf16>
    %c2 = arith.constant 2 : index
    %c0_8 = arith.constant 0 : index
    %c0_9 = arith.constant 0 : index
    %18 = vector.load %arg3[%c2, %c0_8, %c0_9] : memref<9x128x128xbf16, #tpu.memory_space<vmem>>, vector<1x128x128xbf16>
    %19 = vector.shape_cast %18 : vector<1x128x128xbf16> to vector<128x128xbf16>
    %cst_10 = arith.constant dense<0.000000e+00> : vector<256x128xf32>
    %20 = tpu.matmul %17, %19, %cst_10 {dimension_numbers = #tpu.dot_dimension_numbers<[1], [0], [0], [1], [0, 0, 1, 1], [], []>} : vector<256x128xbf16>, vector<128x128xbf16>, vector<256x128xf32> -> vector<256x128xf32>
    %21 = arith.addf %15, %20 : vector<256x128xf32>
    %22 = vector.extract_strided_slice %4 {offsets = [1, 0, 0], sizes = [16, 16, 128], strides = [1, 1, 1]} : vector<18x18x128xbf16> to vector<16x16x128xbf16>
    %23 = vector.shape_cast %22 : vector<16x16x128xbf16> to vector<256x128xbf16>
    %c3 = arith.constant 3 : index
    %c0_11 = arith.constant 0 : index
    %c0_12 = arith.constant 0 : index
    %24 = vector.load %arg3[%c3, %c0_11, %c0_12] : memref<9x128x128xbf16, #tpu.memory_space<vmem>>, vector<1x128x128xbf16>
    %25 = vector.shape_cast %24 : vector<1x128x128xbf16> to vector<128x128xbf16>
    %cst_13 = arith.constant dense<0.000000e+00> : vector<256x128xf32>
    %26 = tpu.matmul %23, %25, %cst_13 {dimension_numbers = #tpu.dot_dimension_numbers<[1], [0], [0], [1], [0, 0, 1, 1], [], []>} : vector<256x128xbf16>, vector<128x128xbf16>, vector<256x128xf32> -> vector<256x128xf32>
    %27 = arith.addf %21, %26 : vector<256x128xf32>
    %28 = vector.extract_strided_slice %4 {offsets = [1, 1, 0], sizes = [16, 16, 128], strides = [1, 1, 1]} : vector<18x18x128xbf16> to vector<16x16x128xbf16>
    %29 = vector.shape_cast %28 : vector<16x16x128xbf16> to vector<256x128xbf16>
    %c4 = arith.constant 4 : index
    %c0_14 = arith.constant 0 : index
    %c0_15 = arith.constant 0 : index
    %30 = vector.load %arg3[%c4, %c0_14, %c0_15] : memref<9x128x128xbf16, #tpu.memory_space<vmem>>, vector<1x128x128xbf16>
    %31 = vector.shape_cast %30 : vector<1x128x128xbf16> to vector<128x128xbf16>
    %cst_16 = arith.constant dense<0.000000e+00> : vector<256x128xf32>
    %32 = tpu.matmul %29, %31, %cst_16 {dimension_numbers = #tpu.dot_dimension_numbers<[1], [0], [0], [1], [0, 0, 1, 1], [], []>} : vector<256x128xbf16>, vector<128x128xbf16>, vector<256x128xf32> -> vector<256x128xf32>
    %33 = arith.addf %27, %32 : vector<256x128xf32>
    %34 = vector.extract_strided_slice %4 {offsets = [1, 2, 0], sizes = [16, 16, 128], strides = [1, 1, 1]} : vector<18x18x128xbf16> to vector<16x16x128xbf16>
    %35 = vector.shape_cast %34 : vector<16x16x128xbf16> to vector<256x128xbf16>
    %c5 = arith.constant 5 : index
    %c0_17 = arith.constant 0 : index
    %c0_18 = arith.constant 0 : index
    %36 = vector.load %arg3[%c5, %c0_17, %c0_18] : memref<9x128x128xbf16, #tpu.memory_space<vmem>>, vector<1x128x128xbf16>
    %37 = vector.shape_cast %36 : vector<1x128x128xbf16> to vector<128x128xbf16>
    %cst_19 = arith.constant dense<0.000000e+00> : vector<256x128xf32>
    %38 = tpu.matmul %35, %37, %cst_19 {dimension_numbers = #tpu.dot_dimension_numbers<[1], [0], [0], [1], [0, 0, 1, 1], [], []>} : vector<256x128xbf16>, vector<128x128xbf16>, vector<256x128xf32> -> vector<256x128xf32>
    %39 = arith.addf %33, %38 : vector<256x128xf32>
    %40 = vector.extract_strided_slice %4 {offsets = [2, 0, 0], sizes = [16, 16, 128], strides = [1, 1, 1]} : vector<18x18x128xbf16> to vector<16x16x128xbf16>
    %41 = vector.shape_cast %40 : vector<16x16x128xbf16> to vector<256x128xbf16>
    %c6 = arith.constant 6 : index
    %c0_20 = arith.constant 0 : index
    %c0_21 = arith.constant 0 : index
    %42 = vector.load %arg3[%c6, %c0_20, %c0_21] : memref<9x128x128xbf16, #tpu.memory_space<vmem>>, vector<1x128x128xbf16>
    %43 = vector.shape_cast %42 : vector<1x128x128xbf16> to vector<128x128xbf16>
    %cst_22 = arith.constant dense<0.000000e+00> : vector<256x128xf32>
    %44 = tpu.matmul %41, %43, %cst_22 {dimension_numbers = #tpu.dot_dimension_numbers<[1], [0], [0], [1], [0, 0, 1, 1], [], []>} : vector<256x128xbf16>, vector<128x128xbf16>, vector<256x128xf32> -> vector<256x128xf32>
    %45 = arith.addf %39, %44 : vector<256x128xf32>
    %46 = vector.extract_strided_slice %4 {offsets = [2, 1, 0], sizes = [16, 16, 128], strides = [1, 1, 1]} : vector<18x18x128xbf16> to vector<16x16x128xbf16>
    %47 = vector.shape_cast %46 : vector<16x16x128xbf16> to vector<256x128xbf16>
    %c7 = arith.constant 7 : index
    %c0_23 = arith.constant 0 : index
    %c0_24 = arith.constant 0 : index
    %48 = vector.load %arg3[%c7, %c0_23, %c0_24] : memref<9x128x128xbf16, #tpu.memory_space<vmem>>, vector<1x128x128xbf16>
    %49 = vector.shape_cast %48 : vector<1x128x128xbf16> to vector<128x128xbf16>
    %cst_25 = arith.constant dense<0.000000e+00> : vector<256x128xf32>
    %50 = tpu.matmul %47, %49, %cst_25 {dimension_numbers = #tpu.dot_dimension_numbers<[1], [0], [0], [1], [0, 0, 1, 1], [], []>} : vector<256x128xbf16>, vector<128x128xbf16>, vector<256x128xf32> -> vector<256x128xf32>
    %51 = arith.addf %45, %50 : vector<256x128xf32>
    %52 = vector.extract_strided_slice %4 {offsets = [2, 2, 0], sizes = [16, 16, 128], strides = [1, 1, 1]} : vector<18x18x128xbf16> to vector<16x16x128xbf16>
    %53 = vector.shape_cast %52 : vector<16x16x128xbf16> to vector<256x128xbf16>
    %c8 = arith.constant 8 : index
    %c0_26 = arith.constant 0 : index
    %c0_27 = arith.constant 0 : index
    %54 = vector.load %arg3[%c8, %c0_26, %c0_27] : memref<9x128x128xbf16, #tpu.memory_space<vmem>>, vector<1x128x128xbf16>
    %55 = vector.shape_cast %54 : vector<1x128x128xbf16> to vector<128x128xbf16>
    %cst_28 = arith.constant dense<0.000000e+00> : vector<256x128xf32>
    %56 = tpu.matmul %53, %55, %cst_28 {dimension_numbers = #tpu.dot_dimension_numbers<[1], [0], [0], [1], [0, 0, 1, 1], [], []>} : vector<256x128xbf16>, vector<128x128xbf16>, vector<256x128xf32> -> vector<256x128xf32>
    %57 = arith.addf %51, %56 : vector<256x128xf32>
    %cst_29 = arith.constant dense<0.000000e+00> : vector<128xf32>
    %58 = vector.multi_reduction <add>, %57, %cst_29 [0] : vector<256x128xf32> to vector<128xf32>
    %59 = vector.shape_cast %58 : vector<128xf32> to vector<1x128xf32>
    %60 = arith.mulf %57, %57 : vector<256x128xf32>
    %cst_30 = arith.constant dense<0.000000e+00> : vector<128xf32>
    %61 = vector.multi_reduction <add>, %60, %cst_30 [0] : vector<256x128xf32> to vector<128xf32>
    %62 = vector.shape_cast %61 : vector<128xf32> to vector<1x128xf32>
    %63 = tpu.concatenate %59, %62 in 0 : vector<1x128xf32>, vector<1x128xf32> -> vector<2x128xf32>
    %64 = vector.shape_cast %63 : vector<2x128xf32> to vector<1x1x2x128xf32>
    %c0_31 = arith.constant 0 : index
    %c0_32 = arith.constant 0 : index
    %c0_33 = arith.constant 0 : index
    %c0_34 = arith.constant 0 : index
    %65 = vector.load %arg5[%c0_31, %c0_32, %c0_33, %c0_34] : memref<1x1x2x128xf32, #tpu.memory_space<vmem>>, vector<1x1x2x128xf32>
    tpu.vector_store %arg5[%c0_31, %c0_32, %c0_33, %c0_34], %64 {strides = array<i32>} : memref<1x1x2x128xf32, #tpu.memory_space<vmem>>, vector<1x1x2x128xf32>,
    %66 = vector.shape_cast %57 : vector<256x128xf32> to vector<16x16x128xf32>
    %67 = arith.truncf %66 : vector<16x16x128xf32> to vector<16x16x128xbf16>
    %c0_i32 = arith.constant 0 : i32
    %68 = arith.cmpi eq, %arg1, %c0_i32 : i32
    %69 = arith.extui %68 : i1 to i32
    %c0_i32_35 = arith.constant 0 : i32
    %70 = arith.cmpi ne, %69, %c0_i32_35 : i32
    scf.if %70 {
      %cst_40 = arith.constant 0.000000e+00 : bf16
      %78 = vector.broadcast %cst_40 : bf16 to vector<18x128xbf16>
      %c0_41 = arith.constant 0 : index
      %c0_42 = arith.constant 0 : index
      %c0_43 = arith.constant 0 : index
      %c0_44 = arith.constant 0 : index
      %79 = vector.load %arg4[%c0_41, %c0_42, %c0_43, %c0_44] : memref<1x18x18x128xbf16, #tpu.memory_space<vmem>>, vector<1x1x18x128xbf16>
      %80 = vector.shape_cast %79 : vector<1x1x18x128xbf16> to vector<18x128xbf16>
      %81 = vector.shape_cast %78 : vector<18x128xbf16> to vector<1x1x18x128xbf16>
      tpu.vector_store %arg4[%c0_41, %c0_42, %c0_43, %c0_44], %81 {strides = array<i32>} : memref<1x18x18x128xbf16, #tpu.memory_space<vmem>>, vector<1x1x18x128xbf16>,
      %c0_45 = arith.constant 0 : index
      %c17 = arith.constant 17 : index
      %c0_46 = arith.constant 0 : index
      %c0_47 = arith.constant 0 : index
      %82 = vector.load %arg4[%c0_45, %c17, %c0_46, %c0_47] : memref<1x18x18x128xbf16, #tpu.memory_space<vmem>>, vector<1x1x18x128xbf16>
      %83 = vector.shape_cast %82 : vector<1x1x18x128xbf16> to vector<18x128xbf16>
      %84 = vector.shape_cast %78 : vector<18x128xbf16> to vector<1x1x18x128xbf16>
      tpu.vector_store %arg4[%c0_45, %c17, %c0_46, %c0_47], %84 {strides = array<i32>} : memref<1x18x18x128xbf16, #tpu.memory_space<vmem>>, vector<1x1x18x128xbf16>,
    } else {
    }
    %cst_36 = arith.constant 0.000000e+00 : bf16
    %71 = vector.broadcast %cst_36 : bf16 to vector<16x1x128xbf16>
    %72 = tpu.concatenate %71, %67, %71 in 1 : vector<16x1x128xbf16>, vector<16x16x128xbf16>, vector<16x1x128xbf16> -> vector<16x18x128xbf16>
    %c1_i32 = arith.constant 1 : i32
    %73 = arith.addi %1, %c1_i32 : i32
    %c0_37 = arith.constant 0 : index
    %74 = arith.index_cast %73 : i32 to index
    %c0_38 = arith.constant 0 : index
    %c0_39 = arith.constant 0 : index
    %75 = vector.load %arg4[%c0_37, %74, %c0_38, %c0_39] : memref<1x18x18x128xbf16, #tpu.memory_space<vmem>>, vector<1x16x18x128xbf16>
    %76 = vector.shape_cast %75 : vector<1x16x18x128xbf16> to vector<16x18x128xbf16>
    %77 = vector.shape_cast %72 : vector<16x18x128xbf16> to vector<1x16x18x128xbf16>
    tpu.vector_store %arg4[%c0_37, %74, %c0_38, %c0_39], %77 {strides = array<i32>} : memref<1x18x18x128xbf16, #tpu.memory_space<vmem>>, vector<1x16x18x128xbf16>,
    return
  }
  func.func @transform_0(%arg0: i32, %arg1: i32) -> (i32, i32, i32, i32) {
    %c0_i32 = arith.constant 0 : i32
    %c0_i32_0 = arith.constant 0 : i32
    %c0_i32_1 = arith.constant 0 : i32
    %c0_i32_2 = arith.constant 0 : i32
    return %arg0, %c0_i32, %c0_i32_0, %c0_i32_1 : i32, i32, i32, i32
  }
  func.func @transform_1(%arg0: i32, %arg1: i32) -> (i32, i32, i32) {
    %c0_i32 = arith.constant 0 : i32
    %c0_i32_0 = arith.constant 0 : i32
    %c0_i32_1 = arith.constant 0 : i32
    %c0_i32_2 = arith.constant 0 : i32
    return %c0_i32, %c0_i32_0, %c0_i32_1 : i32, i32, i32
  }
  func.func @transform_2(%arg0: i32, %arg1: i32) -> (i32, i32, i32, i32) {
    %c0_i32 = arith.constant 0 : i32
    %c0_i32_0 = arith.constant 0 : i32
    %c0_i32_1 = arith.constant 0 : i32
    %c0_i32_2 = arith.constant 0 : i32
    return %arg0, %c0_i32, %c0_i32_0, %c0_i32_1 : i32, i32, i32, i32
  }
  func.func @transform_3(%arg0: i32, %arg1: i32) -> (i32, i32, i32, i32) {
    %c0_i32 = arith.constant 0 : i32
    %c0_i32_0 = arith.constant 0 : i32
    %c0_i32_1 = arith.constant 0 : i32
    return %arg0, %arg1, %c0_i32, %c0_i32_0 : i32, i32, i32, i32
  }
}

</mosaic_0001>

<bundles_post_ra>
// kernel: tpu_custom_call.1
= control target key start
LH: loop header
LB: loop body
LE: loop exit
PB: predicated region body
PF: predicated region fallthrough
CT: control target
= control target key end

     0   :  { %9 = vsyncpa [#allocation3], 0  ;;  %s6973_s0 = inlined_call_operand.vmem [shape: bf16[2,18,18,128], index: 0, kind: input, shape index: {}]   ;;  %s6974_s1 = inlined_call_operand.vmem [shape: bf16[9,128,128], index: 1, kind: input, shape index: {}]   ;;  %s6975_s2 = inlined_call_operand.vmem [shape: bf16[2,18,18,128], index: 2, kind: output, shape index: {0}]   ;;  %s6976_s3 = inlined_call_operand.hbm [shape: f32[2,1,2,128], index: 3, kind: output, shape index: {1}]  }
   0x1   :  { %11 = vsyncpa [#allocation3 + $0x1], 0  ;;  %s5580_s12 = smov 0   ;;  %s5582_s13 = smov 0  }
   0x2   :  { %s5584_s14 = smov 0   ;;  %s5586_s15 = smov 0  }
   0x3   :  { %s5588_s16 = smov 0   ;;  %s5590_s17 = smov 0  }
   0x4 LB: > { %s4011_s18 = sadd.s32 4294967295, %s5556_s17   ;;  %s4012_s19 = sadd.s32 4294967294, %s5556_s17   ;;  %s5556_s17 = sphi %s5590_s17, %s17_s17   ;;  %s5552_s16 = sphi %s5588_s16, %s7028_s16   ;;  %s5548_s15 = sphi %s5586_s15, %s7027_s15   ;;  %s5544_s14 = sphi %s5584_s14, %s7026_s14   ;;  %s5540_s13 = sphi %s5582_s13, %s7025_s13   ;;  %s5536_s12 = sphi %s5580_s12, %s7024_s12  }
   0x5   : > { %s29_s20 = sadd.s32 1, %s5552_s16  ;;  %s111_s21 = sadd.s32 1, %s5544_s14 }
   0x6   : > { %p31_p0 = scmp.ge.s32.totalorder %s29_s20, 2  ;;  %p121_p1 = scmp.ne.s32.totalorder %s5544_s14, %s5540_s13 }
   0x7   : > { %p122_p2 = scmp.eq.s32.totalorder %s4011_s18, 1  ;;  %p127_p3 = scmp.ne.s32.totalorder %s5540_s13, %s5536_s12 }
   0x8   : > { %s7030_s20 = smov (%p31_p0, %s29_s20), 0  ;;  %p128_p5 = scmp.eq.s32.totalorder %s4012_s19, 1 }
   0x9   : > { %p5620_p4 = por %p122_p2, %p121_p1  ;;  %s106_s23 = ssub.s32 %s5552_s16, %s7030_s20 }
   0xa   : > { %p4015_p6 = scmp.ge.s32.totalorder %s5556_s17, 1  ;;  %p109_p7 = scmp.eq.s32.totalorder %s106_s23, 0 }
   0xb   : > { %p5627_p8 = por %p128_p5, %p127_p3  ;;  %p157_p9 = scmp.lt.s32.totalorder %s5556_s17, 3 }
   0xc   : > { %s5633_s25 = scalar_select %p109_p7, %s5544_s14, %s111_s21  }
   0xd   : > { %p158_p10 = pnand %p4015_p6, %p157_p9 }
   0xf   : > { %161 = sbr.rel (%p158_p10) target bundleno = 600 (0x258), region = 28 }
  0x16   : > { %v5371_v0 = vld [vmem:[%s6974_s1 + $0x40] sm:$0xff]   ;;  %p186_p11 = scmp.lt.s32.totalorder %s5548_s15, 1  ;;  %v5373_v2 = vld [vmem:[%s6974_s1 + $0x48] sm:$0xff]   ;;  %v5375_v4 = vld [vmem:[%s6974_s1 + $0x50] sm:$0xff]   ;;  %vm271_vm0 = vsmask.f32 3328 }
  0x17   : > { %v5372_v1 = vld [vmem:[%s6974_s1 + $0x100] sm:$0xff]   ;;  %4610 = vmatprep.subr.bf16.mxu1 %v5371_v0  ;;  %v5374_v3 = vld [vmem:[%s6974_s1 + $0x108] sm:$0xff]   ;;  %v5376_v5 = vld [vmem:[%s6974_s1 + $0x110] sm:$0xff]   ;;  %vm272_vm1 = vsmask.f32 7440  ;;  %vm1269_vm3 = vcmask 1042432  }
  0x18   : > { %4802 = vmatprep.subr.bf16.mxu0 %v5372_v1  ;;  %4611 = vmatpush3.bf16.msra.mxu1 %v5371_v0  ;;  %s5655_s11 = scalar_select %p186_p11, %s5548_s15, 1  ;;  %v5377_v6 = vld [vmem:[%s6974_s1 + $0x58] sm:$0xff]   ;;  %v5379_v8 = vld [vmem:[%s6974_s1 + $0x60] sm:$0xff]   ;;  %v5381_v10 = vld [vmem:[%s6974_s1 + $0x68] sm:$0xff]   ;;  %vm1270_vm4 = vcmask 1046532   ;;  %vm3452_vm6 = vcmask 1040384  }
  0x19   : > { %4803 = vmatpush3.bf16.msra.mxu0 %v5372_v1  ;;  %4612 = vmatprep.subr.bf16.mxu1 %v5373_v2  ;;  %v5378_v7 = vld [vmem:[%s6974_s1 + $0x118] sm:$0xff]   ;;  %v5380_v9 = vld [vmem:[%s6974_s1 + $0x120] sm:$0xff]   ;;  %v5382_v11 = vld [vmem:[%s6974_s1 + $0x128] sm:$0xff]   ;;  %vm3627_vm7 = vsmask.f32 256  ;;  %s4391_s9 = sshll.u32 %s5548_s15, 5 }
  0x1a   : > { %4804 = vmatprep.subr.bf16.mxu0 %v5374_v3  ;;  %s5314_s26 = smul.u32 216, %s5655_s11  ;;  %v5383_v17 = vld [vmem:[%s6974_s1 + $0x70] sm:$0xff]   ;;  %v5385_v36 = vld [vmem:[%s6974_s1 + $0x78] sm:$0xff]   ;;  %vm5720_vm2 = vmor %vm271_vm0, %vm272_vm1  ;;  %s183_s11 = sand.u32 1, %s5540_s13  }
  0x1b   : > { %v5384_v31 = vld [vmem:[%s6974_s1 + $0x130] sm:$0xff]   ;;  %v5386_v53 = vld [vmem:[%s6974_s1 + $0x138] sm:$0xff]   ;;  %v5387_v1 = vld [vmem:[%s6974_s1] sm:$0xff]   ;;  %s6923_s21 = scalar_lea.hbm %s6976_s3, %s4391_s9  ;;  %s3895_s15 = scalar_lea.sflag [#allocation3], %s183_s11 }
  0x1c   : > { %4613 = vmatpush3.bf16.msra.mxu1 %v5373_v2  ;;  %s5675_s6 = scalar_lea.vmem %s6973_s0, %s5314_s26  ;;  %vm5927_vm5 = vmor %vm1269_vm3, %vm1270_vm4  ;;  %v5477_v37 = vld [vmem:[%s6974_s1 + $0x138] sm:$0xff]   ;;  %s6626_s8 = scalar_lea.vmem %s6975_s2, %s5314_s26 }
  0x1d   : > { %4805 = vmatpush3.bf16.msra.mxu0 %v5374_v3  ;;  %4614 = vmatprep.subr.bf16.mxu1 %v5375_v4  ;;  %v5684_v12 = vld [vmem:[%s5675_s6] sm:$0xf]  ;;  %v5687_v13 = vld [vmem:[%s5675_s6 + $0x4] sm:$0xf]  ;;  %v203_v14 = vld [vmem:[%s5675_s6 + $0x8] sm:$0x1] }
  0x1e   : > { %4806 = vmatprep.subr.bf16.mxu0 %v5376_v5  ;;  %v275_v15 = vshrl.u32 %v5684_v12, 16  ;;  %v278_v16 = vshll.u32 %v5684_v12, 16  ;;  %v284_v18 = vshll.u32 %v5687_v13, 16  ;;  %v288_v19 = vshrl.u32 %v5687_v13, 16  ;;  %v5698_v21 = vld [vmem:[%s5675_s6 + $0xc] sm:$0xf]  ;;  %vm6651_vm8 = vmand %vm3452_vm6, %vm3627_vm7 }
  0x1f   : > { %v294_v20 = vshll.u32 %v203_v14, 16  ;;  %v5701_v24 = vld [vmem:[%s5675_s6 + $0x10] sm:$0xf]  ;;  %v5704_v25 = vld [vmem:[%s5675_s6 + $0x14] sm:$0x1]  ;;  %v299_v30 = vshrl.u32 %v5698_v21, 16 }
  0x20   : > { %4615 = vmatpush3.bf16.msra.mxu1 %v5375_v4  ;;  %v277_v22 = vrot.slane %v275_v15, 4  ;;  %v280_v23 = vrot.slane %v278_v16, 5  ;;  %v286_v27 = vrot.slane %v284_v18, 5  ;;  %v290_v28 = vrot.slane %v288_v19, 4  ;;  %v5726_v41 = vld [vmem:[%s5675_s6 + $0x18] sm:$0xf] }
  0x21   : > { %4807 = vmatpush3.bf16.msra.mxu0 %v5376_v5  ;;  %4616 = vmatprep.subr.bf16.mxu1 %v5377_v6  ;;  %v296_v29 = vrot.slane %v294_v20, 5  ;;  %v302_v33 = vshll.u32 %v5698_v21, 16  ;;  %v308_v34 = vshll.u32 %v5701_v24, 16  ;;  %v312_v35 = vshrl.u32 %v5701_v24, 16  ;;  %v5729_v42 = vld [vmem:[%s5675_s6 + $0x1c] sm:$0xf] }
  0x22   : > { %4808 = vmatprep.subr.bf16.mxu0 %v5378_v7  ;;  %v281_v32 = vor.u32 %v280_v23, %v277_v22  ;;  %v291_v38 = vor.u32 %v290_v28, %v286_v27  ;;  %v301_v39 = vrot.slane %v299_v30, 4  ;;  %v318_v40 = vshll.u32 %v5704_v25, 16  ;;  %v5736_v48 = vld [vmem:[%s5675_s6 + $0x20] sm:$0x1]  ;;  %v5753_v3 = vld [vmem:[%s5675_s6 + $0x24] sm:$0xf] }
  0x23   : > { %v5733_v43 = vcombine.low %v5698_v21, %v5701_v24  ;;  %v304_v45 = vrot.slane %v302_v33, 5  ;;  %v310_v46 = vrot.slane %v308_v34, 5  ;;  %v314_v47 = vrot.slane %v312_v35, 4  ;;  %v5768_v14 = vld [vmem:[%s5675_s6 + $0x2c] sm:$0x1]  ;;  %s6860_s26 = sshll.u32 %s183_s11, 1 }
  0x24   : > { %4617 = vmatpush3.bf16.msra.mxu1 %v5377_v6  ;;  %v282_v44 = vrot.slane %v281_v32, 4  ;;  %v292_v49 = vrot.slane %v291_v38, 4  ;;  %v320_v50 = vrot.slane %v318_v40, 5  ;;  %v323_v51 = vshrl.u32 %v5726_v41, 16  ;;  %v5773_v22 = vld [vmem:[%s5675_s6 + $0x30] sm:$0xf] }
  0x25   : > { %4809 = vmatpush3.bf16.msra.mxu0 %v5378_v7  ;;  %4618 = vmatprep.subr.bf16.mxu1 %v5379_v8  ;;  %v326_v52 = vshll.u32 %v5726_v41, 16  ;;  %v305_v55 = vor.u32 %v304_v45, %v301_v39  ;;  %v315_v56 = vor.u32 %v314_v47, %v310_v46  ;;  %v332_v57 = vshll.u32 %v5729_v42, 16  ;;  %v5778_v30 = vld [vmem:[%s5675_s6 + $0x34] sm:$0xf]  ;;  %v5390_v34 = vld [vmem:[%s6974_s1 + $0x8] sm:$0xff]   ;;  %s185_s10 = scalar_lea.vmem [#allocation2], %s6860_s26 }
  0x26   : > { %4810 = vmatprep.subr.bf16.mxu0 %v5380_v9  ;;  %v287_v54 = vsel %vm5720_vm2, %v282_v44, %v286_v27  ;;  %v297_v58 = vsel %vm5720_vm2, %v292_v49, %v296_v29  ;;  %v325_v59 = vrot.slane %v323_v51, 4  ;;  %v336_v61 = vshrl.u32 %v5729_v42, 16  ;;  %v5787_v35 = vld [vmem:[%s5675_s6 + $0x38] sm:$0x1]  ;;  %s3912_s18 = sshll.u32 %s185_s10, 4  ;;  %s5559_s27 = smov [#allocation2]   ;;  %s6925_s18 = int_to_ptr.vmem [resolvable:$true] %s3912_s18 }
  0x27   : > { %v328_v60 = vrot.slane %v326_v52, 5  ;;  %v4035_v62 = vcombine.low %v287_v54, %v297_v58  ;;  %v306_v63 = vrot.slane %v305_v55, 4  ;;  %v316_v0 = vrot.slane %v315_v56, 4  ;;  %v5802_v58 = vld [vmem:[%s5675_s6 + $0x3c] sm:$0xf]  ;;  %s5478_s23 = scalar_lea.vmem %s6925_s18, 32 }
  0x28   : > { %4619 = vmatpush3.bf16.msra.mxu1 %v5379_v8  ;;  %v334_v2 = vrot.slane %v332_v57, 5  ;;  %v338_v5 = vrot.slane %v336_v61, 4  ;;  %v342_v6 = vshll.u32 %v5736_v48, 16  ;;  %v1291_v7 = vrot.slane %v5736_v48, 5  ;;  %v5388_v8 = vld [vmem:[%s6974_s1 + $0x140] sm:$0xff]   ;;  %p5479_p12 = scmp.ne.s32.totalorder %s6925_s18, %s5478_s23  ;;  %s5482_s28 = sshll.u32 %s5559_s27, 4  ;;  %s5483_s28 = int_to_ptr.vmem [resolvable:$false] %s5482_s28 }
  0x29   : > { %4811 = vmatpush3.bf16.msra.mxu0 %v5380_v9  ;;  %4620 = vmatprep.subr.bf16.mxu1 %v5381_v10  ;;  %v329_v4 = vor.u32 %v328_v60, %v325_v59  ;;  %v5761_v9 = vld [vmem:[%s5675_s6 + $0x28] sm:$0xf]  ;;  %v347_v15 = vshrl.u32 %v5753_v3, 16  ;;  %v350_v16 = vshll.u32 %v5753_v3, 16  ;;  %v366_v33 = vshll.u32 %v5768_v14, 16  ;;  %v5393_v59 = vld [vmem:[%s6974_s1 + $0x10] sm:$0xff]   ;;  %p5485_p1 = scmp.lt.s32.totalorder %s6925_s18, %s5483_s28 }
  0x2a   : > { %4812 = vmatprep.subr.bf16.mxu0 %v5382_v11  ;;  %4626 = vmatprep.mubr.bf16.mxu1 %v4035_v62  ;;  %v339_v19 = vor.u32 %v338_v5, %v334_v2  ;;  %v344_v20 = vrot.slane %v342_v6, 5  ;;  %v356_v28 = vshll.u32 %v5761_v9, 16  ;;  %v360_v29 = vshrl.u32 %v5761_v9, 16  ;;  %p5480_p13 = pnand %p5479_p12, %p5620_p4  ;;  %s5484_s29 = scalar_lea.vmem %s5483_s28, 64 }
  0x2b   : > { %v330_v18 = vrot.slane %v329_v4, 4  ;;  %v349_v23 = vrot.slane %v347_v15, 4  ;;  %v352_v27 = vrot.slane %v350_v16, 5  ;;  %v374_v44 = vshll.u32 %v5773_v22, 16  ;;  %v5391_v16 = vld [vmem:[%s6974_s1 + $0x150] sm:$0xff]   ;;  %p5486_p2 = scmp.lt.s32.totalorder %s5484_s29, %s5478_s23 }
  0x2c   : > { %4621 = vmatpush3.bf16.msra.mxu1 %v5381_v10  ;;  %v311_v10 = vsel %vm5720_vm2, %v306_v63, %v310_v46  ;;  %v340_v32 = vrot.slane %v339_v19, 4  ;;  %v358_v39 = vrot.slane %v356_v28, 5  ;;  %v362_v40 = vrot.slane %v360_v29, 4  ;;  %v5389_v46 = vld [vmem:[%s6974_s1 + $0x148] sm:$0xff]   ;;  %p5481_p0 = pneg %p5480_p13 }
  0x2d   : > { %4813 = vmatpush3.bf16.msra.mxu0 %v5382_v11  ;;  %4622 = vmatprep.subr.bf16.mxu1 %v5383_v17  ;;  %v321_v11 = vsel %vm5720_vm2, %v316_v0, %v320_v50  ;;  %v353_v38 = vor.u32 %v352_v27, %v349_v23  ;;  %v368_v47 = vrot.slane %v366_v33, 5  ;;  %v380_v50 = vshll.u32 %v5778_v30, 16  ;;  %v5816_v0 = vld [vmem:[%s5675_s6 + $0x40] sm:$0xf]  ;;  %v5833_v27 = vld [vmem:[%s5675_s6 + $0x48] sm:$0xf]  ;;  %p5487_p3 = por %p5486_p2, %p5485_p1 }
  0x2e   : > { %4814 = vmatprep.subr.bf16.mxu0 %v5384_v31  ;;  %v345_v45 = vsel %vm5720_vm2, %v340_v32, %v344_v20  ;;  %v376_v54 = vrot.slane %v374_v44, 5  ;;  %v384_v56 = vshrl.u32 %v5778_v30, 16  ;;  %v390_v57 = vshll.u32 %v5787_v35, 16  ;;  %v5836_v28 = vld [vmem:[%s5675_s6 + $0x4c] sm:$0xf] }
  0x2f   : > { %v354_v52 = vrot.slane %v353_v38, 4  ;;  %v382_v55 = vrot.slane %v380_v50, 5  ;;  %v5809_v60 = vcombine.low %v5726_v41, %v5729_v42  ;;  %v398_v6 = vshll.u32 %v5802_v58, 16  ;;  %v5842_v33 = vld [vmem:[%s5675_s6 + $0x50] sm:$0x1]  ;;  %p5488_p5 = pnand %p5487_p3, %p5481_p0 }
  0x30   : > { %4623 = vmatpush3.bf16.msra.mxu1 %v5383_v17  ;;  %v4036_v17 = vcombine.low %v311_v10, %v321_v11  ;;  %v386_v4 = vrot.slane %v384_v56, 4  ;;  %v392_v5 = vrot.slane %v390_v57, 5  ;;  %v404_v10 = vshll.u32 %v5816_v0, 16 }
  0x31   : > { %4815 = vmatpush3.bf16.msra.mxu0 %v5384_v31  ;;  %4624 = vmatprep.subr.bf16.mxu1 %v5385_v36  ;;  %v335_v31 = vsel %vm5720_vm2, %v330_v18, %v334_v2  ;;  %v359_v61 = vsel %vm5720_vm2, %v354_v52, %v358_v39  ;;  %v395_v2 = vshrl.u32 %v5802_v58, 16  ;;  %v400_v20 = vrot.slane %v398_v6, 5  ;;  %v5873_v6 = vld [vmem:[%s5675_s6 + $0x58] sm:$0xf] }
  0x32   : > { %4816 = vmatprep.subr.bf16.mxu0 %v5386_v53  ;;  %4818 = vmatprep.mubr.bf16.mxu0 %v4036_v17  ;;  %v5797_v51 = vcombine.low %v335_v31, %v345_v45  ;;  %v387_v19 = vor.u32 %v386_v4, %v382_v55  ;;  %v406_v23 = vrot.slane %v404_v10, 5  ;;  %v428_v44 = vshll.u32 %v5836_v28, 16  ;;  %v5392_v45 = vld [vmem:[%s6974_s1 + $0x158] sm:$0xff]  }
  0x33   : > { %v432_v50 = vshrl.u32 %v5836_v28, 16  ;;  %v5876_v10 = vld [vmem:[%s5675_s6 + $0x5c] sm:$0x1] }
  0x34   : > { %4625 = vmatpush3.bf16.msra.mxu1 %v5385_v36  ;;  %v371_v36 = vshrl.u32 %v5773_v22, 16  ;;  %v388_v38 = vrot.slane %v387_v19, 4 }
  0x35   : > { %4817 = vmatpush3.bf16.msra.mxu0 %v5386_v53  ;;  %4658 = vmatprep.subr.bf16.mxu1 %v5387_v1  ;;  %v363_v53 = vor.u32 %v362_v40, %v358_v39  ;;  %v422_v40 = vshll.u32 %v5833_v27, 16 }
  0x36   : > { %4850 = vmatprep.subr.bf16.mxu0 %v5388_v8  ;;  %v373_v49 = vrot.slane %v371_v36, 4  ;;  %v5396_v36 = vld [vmem:[%s6974_s1 + $0x18] sm:$0xff]   ;;  %v393_v52 = vsel %vm5720_vm2, %v388_v38, %v392_v5  ;;  %v5870_v5 = vld [vmem:[%s5675_s6 + $0x54] sm:$0xf] }
  0x37   : > { %4627 = vmatmul.mubr.bf16.vlgmr.msra.gmra.mrb[0].mxu1 %v4036_v17  ;;  %v364_v62 = vrot.slane %v363_v53, 4  ;;  %v408_v17 = vshrl.u32 %v5816_v0, 16  ;;  %v443_v19 = vshrl.u32 %v5870_v5, 16 }
  0x38   : > { %4659 = vmatpush3.bf16.msra.mxu1 %v5387_v1  ;;  %4819 = vmatmul.mubr.bf16.vlgmr.msra.gmra.mrb[0].mxu0 %v5797_v51  ;;  %v377_v63 = vor.u32 %v376_v54, %v373_v49  ;;  %v5819_v1 = vld [vmem:[%s5675_s6 + $0x44] sm:$0x1]  ;;  %v424_v54 = vrot.slane %v422_v40, 5  ;;  %v456_v40 = vshrl.u32 %v5873_v6, 16 }
  0x39   : > { %4660 = vmatprep.subr.bf16.mxu1 %v5390_v34  ;;  %4630 = vmatprep.mubr.bf16.mxu1 %v5797_v51  ;;  %v369_v11 = vsel %vm5720_vm2, %v364_v62, %v368_v47  ;;  %v410_v31 = vrot.slane %v408_v17, 4  ;;  %v414_v32 = vshll.u32 %v5819_v1, 16  ;;  %v438_v62 = vshll.u32 %v5842_v33, 16 }
  0x3a   : > { %4851 = vmatpush3.bf16.msra.mxu0 %v5388_v8  ;;  %v378_v15 = vrot.slane %v377_v63, 4  ;;  %v397_v8 = vrot.slane %v395_v2, 4  ;;  %v5830_v18 = vcombine.low %v359_v61, %v369_v11  ;;  %v434_v61 = vrot.slane %v432_v50, 4  ;;  %v5394_v63 = vld [vmem:[%s6974_s1 + $0x160] sm:$0xff]   ;;  %v5910_v50 = vld [vmem:[%s5675_s6 + $0x68] sm:$0x1] }
  0x3b   : > { %4852 = vmatprep.subr.bf16.mxu0 %v5389_v46  ;;  %v411_v47 = vor.u32 %v410_v31, %v406_v23  ;;  %v416_v49 = vrot.slane %v414_v32, 5  ;;  %v5399_v2 = vld [vmem:[%s6974_s1 + $0x20] sm:$0xff]   ;;  %v5880_v11 = vcombine.low %v5753_v3, %v5761_v9  ;;  %v440_v17 = vrot.slane %v438_v62, 5 }
  0x3c   : > { %4661 = vmatpush3.bf16.msra.mxu1 %v5390_v34  ;;  %6997 = vst [vmem:[#allocation5_spill] sm:$0xff] %v5830_v18  ;;  %v383_v29 = vsel %vm5720_vm2, %v378_v15, %v382_v55  ;;  %v419_v34 = vshrl.u32 %v5833_v27, 16  ;;  %4822 = vmatprep.mubr.bf16.mxu0 %v5830_v18  ;;  %v401_v39 = vor.u32 %v400_v20, %v397_v8  ;;  %v430_v55 = vrot.slane %v428_v44, 5  ;;  %v5896_v32 = vld [vmem:[%s5675_s6 + $0x60] sm:$0xf] }
  0x3d   : > { %4662 = vmatprep.subr.bf16.mxu1 %v5393_v59  ;;  %v5858_v56 = vcombine.low %v383_v29, %v393_v52  ;;  %v412_v57 = vrot.slane %v411_v47, 4  ;;  %v5884_v15 = vcombine.low %v5773_v22, %v5778_v30  ;;  %v446_v29 = vshll.u32 %v5870_v5, 16  ;;  %v5904_v47 = vld [vmem:[%s5675_s6 + $0x64] sm:$0xf] }
  0x3e   : > { %4853 = vmatpush3.bf16.msra.mxu0 %v5389_v46  ;;  %v421_v46 = vrot.slane %v419_v34, 4  ;;  %v402_v53 = vrot.slane %v401_v39, 4  ;;  %v435_v8 = vor.u32 %v434_v61, %v430_v55  ;;  %v452_v31 = vshll.u32 %v5873_v6, 16  ;;  %v5401_v34 = vld [vmem:[%s6974_s1 + $0x28] sm:$0xff]  }
  0x3f   : > { %4631 = vmatmul.mubr.bf16.gmra.mrb[4].mxu1 %v5830_v18  ;;  %4854 = vmatprep.subr.bf16.mxu0 %v5391_v16  ;;  %6998 = vst [vmem:[#allocation6_spill] sm:$0xff] %v5858_v56  ;;  %v445_v39 = vrot.slane %v443_v19, 4  ;;  %v462_v44 = vshll.u32 %v5876_v10, 16  ;;  %v467_v52 = vshrl.u32 %v5896_v32, 16  ;;  %v486_v19 = vshll.u32 %v5910_v50, 16 }
  0x40   : > { %4663 = vmatpush3.bf16.msra.mxu1 %v5393_v59  ;;  %v407_v4 = vsel %vm5720_vm2, %v402_v53, %v406_v23  ;;  %v425_v59 = vor.u32 %v424_v54, %v421_v46  ;;  %4823 = vmatmul.mubr.bf16.gmra.mrb[4].mxu0 %v5858_v56  ;;  %v436_v38 = vrot.slane %v435_v8, 4  ;;  %v454_v46 = vrot.slane %v452_v31, 5 }
  0x41   : > { %4664 = vmatprep.subr.bf16.mxu1 %v5396_v36  ;;  %4634 = vmatprep.mubr.bf16.mxu1 %v5858_v56  ;;  %v458_v54 = vrot.slane %v456_v40, 4  ;;  %v5938_v40 = vld [vmem:[%s5675_s6 + $0x6c] sm:$0xf] }
  0x42   : > { %4855 = vmatpush3.bf16.msra.mxu0 %v5391_v16  ;;  %v417_v16 = vsel %vm5720_vm2, %v412_v57, %v416_v49  ;;  %v426_v23 = vrot.slane %v425_v59, 4  ;;  %v441_v53 = vsel %vm5720_vm2, %v436_v38, %v440_v17  ;;  %v464_v57 = vrot.slane %v462_v44, 5 }
  0x43   : > { %4856 = vmatprep.subr.bf16.mxu0 %v5392_v45  ;;  %v5891_v20 = vcombine.low %v407_v4, %v417_v16  ;;  %v469_v4 = vrot.slane %v467_v52, 4  ;;  %v476_v59 = vshll.u32 %v5904_v47, 16  ;;  %v459_v16 = vor.u32 %v458_v54, %v454_v46 }
  0x44   : > { %4665 = vmatpush3.bf16.msra.mxu1 %v5396_v36  ;;  %v431_v49 = vsel %vm5720_vm2, %v426_v23, %v430_v55  ;;  %v448_v36 = vrot.slane %v446_v29, 5  ;;  %v470_v55 = vshll.u32 %v5896_v32, 16  ;;  %v480_v17 = vshrl.u32 %v5904_v47, 16  ;;  %v5403_v29 = vld [vmem:[%s6974_s1 + $0x30] sm:$0xff]  }
  0x45   : > { %6999 = vst [vmem:[#allocation7_spill] sm:$0xff] %v5891_v20  ;;  %4666 = vmatprep.subr.bf16.mxu1 %v5399_v2  ;;  %4826 = vmatprep.mubr.bf16.mxu0 %v5891_v20  ;;  %v5920_v61 = vcombine.low %v431_v49, %v441_v53  ;;  %v478_v31 = vrot.slane %v476_v59, 5  ;;  %v4084_v38 = vrot.slane %v5698_v21, 9  ;;  %v460_v44 = vrot.slane %v459_v16, 4  ;;  %v5945_v53 = vld [vmem:[%s5675_s6 + $0x70] sm:$0xf] }
  0x46   : > { %4857 = vmatpush3.bf16.msra.mxu0 %v5392_v45  ;;  %v5395_v45 = vld [vmem:[%s6974_s1 + $0x168] sm:$0xff]   ;;  %v449_v62 = vor.u32 %v448_v36, %v445_v39  ;;  %v472_v8 = vrot.slane %v470_v55, 5  ;;  %v1281_v39 = vrot.slane %v5701_v24, 5  ;;  %v482_v36 = vrot.slane %v480_v17, 4 }
  0x47   : > { %4635 = vmatmul.mubr.bf16.gmra.mrb[8].mxu1 %v5891_v20  ;;  %4858 = vmatprep.subr.bf16.mxu0 %v5394_v63  ;;  %7000 = vst [vmem:[#allocation8_spill] sm:$0xff] %v5920_v61  ;;  %v488_v52 = vrot.slane %v486_v19, 5  ;;  %v1284_v55 = vrot.slane %v5704_v25, 5  ;;  %v465_v59 = vsel %vm5720_vm2, %v460_v44, %v464_v57  ;;  %v500_v19 = vshll.u32 %v5945_v53, 16 }
  0x48   : > { %4667 = vmatpush3.bf16.msra.mxu1 %v5399_v2  ;;  %4638 = vmatprep.mubr.bf16.mxu1 %v5920_v61  ;;  %v450_v2 = vrot.slane %v449_v62, 4  ;;  %v473_v49 = vor.u32 %v472_v8, %v469_v4  ;;  %v1282_v24 = vsel %vm5927_vm5, %v4084_v38, %v1281_v39  ;;  %v1283_v54 = vrot.slane %v1281_v39, 4  ;;  %v5953_v62 = vld [vmem:[%s5675_s6 + $0x74] sm:$0x1]  ;;  %v5405_v4 = vld [vmem:[%s6974_s1 + $0x38] sm:$0xff]  }
  0x49   : > { %4668 = vmatprep.subr.bf16.mxu1 %v5401_v34  ;;  %4827 = vmatmul.mubr.bf16.gmra.mrb[8].mxu0 %v5920_v61  ;;  %v483_v8 = vor.u32 %v482_v36, %v478_v31  ;;  %v502_v36 = vrot.slane %v500_v19, 5  ;;  %v1302_v20 = vrot.slane %v5778_v30, 5 }
  0x4a   : > { %4859 = vmatpush3.bf16.msra.mxu0 %v5394_v63  ;;  %v5397_v63 = vld [vmem:[%s6974_s1 + $0x170] sm:$0xff]   ;;  %v455_v21 = vsel %vm5720_vm2, %v450_v2, %v454_v46  ;;  %v474_v16 = vrot.slane %v473_v49, 4  ;;  %v491_v46 = vshrl.u32 %v5938_v40, 16  ;;  %v1285_v25 = vsel %vm5927_vm5, %v1283_v54, %v1284_v55  ;;  %v5968_v2 = vld [vmem:[%s5675_s6 + $0x78] sm:$0xf] }
  0x4b   : > { %4860 = vmatprep.subr.bf16.mxu0 %v5395_v45  ;;  %v5961_v17 = vcombine.low %v455_v21, %v465_v59  ;;  %v484_v38 = vrot.slane %v483_v8, 4  ;;  %v5975_v39 = vcombine.low %v1282_v24, %v1285_v25  ;;  %v504_v21 = vshrl.u32 %v5945_v53, 16  ;;  %v5982_v54 = vld [vmem:[%s5675_s6 + $0x7c] sm:$0xf] }
  0x4c   : > { %4669 = vmatpush3.bf16.msra.mxu1 %v5401_v34  ;;  %v494_v34 = vshll.u32 %v5938_v40, 16  ;;  %v479_v57 = vsel %vm5720_vm2, %v474_v16, %v478_v31  ;;  %v493_v44 = vrot.slane %v491_v46, 4  ;;  %v510_v31 = vshll.u32 %v5953_v62, 16  ;;  %v5989_v16 = vld [vmem:[%s5675_s6 + $0x80] sm:$0x1] }
  0x4d   : > { %4670 = vmatprep.subr.bf16.mxu1 %v5403_v29  ;;  %7003 = vst [vmem:[#allocation9_spill] sm:$0xff] %v5961_v17  ;;  %4830 = vmatprep.mubr.bf16.mxu0 %v5961_v17  ;;  %v489_v55 = vsel %vm5720_vm2, %v484_v38, %v488_v52  ;;  %v4085_v59 = vrot.slane %v5726_v41, 9  ;;  %v1288_v24 = vrot.slane %v5729_v42, 5  ;;  %v515_v8 = vshrl.u32 %v5968_v2, 16  ;;  %v5997_v52 = vld [vmem:[%s6974_s1 + $0x80] sm:$0xff]  }
  0x4e   : > { %4861 = vmatpush3.bf16.msra.mxu0 %v5395_v45  ;;  %v5398_v45 = vld [vmem:[%s6974_s1 + $0x178] sm:$0xff]   ;;  %v496_v49 = vrot.slane %v494_v34, 5  ;;  %v5992_v46 = vcombine.low %v479_v57, %v489_v55  ;;  %v506_v34 = vrot.slane %v504_v21, 4  ;;  %v512_v19 = vrot.slane %v510_v31, 5  ;;  %v6006_v38 = vld [vmem:[%s5675_s6 + $0x84] sm:$0xf] }
  0x4f   : > { %4862 = vmatprep.subr.bf16.mxu0 %v5397_v63  ;;  %4639 = vmatmul.mubr.bf16.gmra.mrb[12].mxu1 %v5961_v17  ;;  %v1289_v41 = vsel %vm5927_vm5, %v4085_v59, %v1288_v24  ;;  %v1290_v42 = vrot.slane %v1288_v24, 4  ;;  %v517_v57 = vrot.slane %v515_v8, 4  ;;  %v524_v21 = vshll.u32 %v5982_v54, 16 }
  0x50   : > { %4671 = vmatpush3.bf16.msra.mxu1 %v5403_v29  ;;  %7004 = vst [vmem:[#allocation10_spill] sm:$0xff] %v5992_v46  ;;  %v497_v25 = vor.u32 %v496_v49, %v493_v44  ;;  %v5400_v29 = vld [vmem:[%s6974_s1 + $0x180] sm:$0xff]   ;;  %4642 = vmatprep.mubr.bf16.mxu1 %v5992_v46  ;;  %v507_v49 = vor.u32 %v506_v34, %v502_v36  ;;  %v528_v31 = vshrl.u32 %v5982_v54, 16  ;;  %v534_v24 = vshll.u32 %v5989_v16, 16 }
  0x51   : > { %4672 = vmatprep.subr.bf16.mxu1 %v5405_v4  ;;  %4831 = vmatmul.mubr.bf16.gmra.mrb[12].mxu0 %v5992_v46  ;;  %v1292_v55 = vsel %vm5927_vm5, %v1290_v42, %v1291_v7  ;;  %v4086_v8 = vrot.slane %v5753_v3, 9  ;;  %v526_v46 = vrot.slane %v524_v21, 5  ;;  %v6026_v3 = vld [vmem:[%s5675_s6 + $0x88] sm:$0xf] }
  0x52   : > { %4863 = vmatpush3.bf16.msra.mxu0 %v5397_v63  ;;  %v518_v63 = vshll.u32 %v5968_v2, 16  ;;  %v498_v44 = vrot.slane %v497_v25, 4  ;;  %4866 = vmatprep.mubr.bf16.mxu0 %v5975_v39  ;;  %v508_v34 = vrot.slane %v507_v49, 4  ;;  %v6021_v26 = vcombine.low %v1289_v41, %v1292_v55 }
  0x53   : > { %4864 = vmatprep.subr.bf16.mxu0 %v5398_v45  ;;  %v530_v7 = vrot.slane %v528_v31, 4  ;;  %v536_v42 = vrot.slane %v534_v24, 5  ;;  %v539_v41 = vshrl.u32 %v6006_v38, 16  ;;  %v5402_v31 = vld [vmem:[%s6974_s1 + $0x188] sm:$0xff]   ;;  %v6045_v24 = vld [vmem:[%s5675_s6 + $0x90] sm:$0xf] }
  0x54   : > { %v520_v59 = vrot.slane %v518_v63, 5  ;;  %4673 = vmatpush3.bf16.msra.mxu1 %v5405_v4  ;;  %v503_v25 = vsel %vm5720_vm2, %v498_v44, %v502_v36  ;;  %v1295_v63 = vrot.slane %v5761_v9, 5  ;;  %v513_v4 = vsel %vm5720_vm2, %v508_v34, %v512_v19  ;;  %v6032_v36 = vld [vmem:[%s5675_s6 + $0x8c] sm:$0x1]  ;;  %v6048_v34 = vld [vmem:[%s5675_s6 + $0x94] sm:$0xf] }
  0x55   : > { %4706 = vmatprep.subr.bf16.mxu1 %v5997_v52  ;;  %v542_v44 = vshll.u32 %v6006_v38, 16  ;;  %v531_v21 = vor.u32 %v530_v7, %v526_v46  ;;  %v541_v55 = vrot.slane %v539_v41, 4  ;;  %v558_v7 = vshll.u32 %v6032_v36, 16 }
  0x56   : > { %4865 = vmatpush3.bf16.msra.mxu0 %v5398_v45  ;;  %v521_v48 = vor.u32 %v520_v59, %v517_v57  ;;  %v1298_v45 = vrot.slane %v5768_v14, 5  ;;  %v6036_v57 = vcombine.low %v503_v25, %v513_v4  ;;  %v1296_v9 = vsel %vm5927_vm5, %v4086_v8, %v1295_v63 }
  0x57   : > { %4898 = vmatprep.subr.bf16.mxu0 %v5400_v29  ;;  %v1297_v19 = vrot.slane %v1295_v63, 4  ;;  %v544_v14 = vrot.slane %v542_v44, 5  ;;  %v548_v59 = vshll.u32 %v6026_v3, 16  ;;  %v552_v8 = vshrl.u32 %v6026_v3, 16 }
  0x58   : > { %7005 = vst [vmem:[#allocation11_spill] sm:$0xff] %v6036_v57  ;;  %v522_v49 = vrot.slane %v521_v48, 4  ;;  %4643 = vmatmul.mubr.bf16.gmra.mrb[16].mxu1 %v6036_v57  ;;  %v532_v48 = vrot.slane %v531_v21, 4  ;;  %v4087_v44 = vrot.slane %v5773_v22, 9  ;;  %v560_v21 = vrot.slane %v558_v7, 5  ;;  %v5404_v22 = vld [vmem:[%s6974_s1 + $0x190] sm:$0xff]  }
  0x59   : > { %4867 = vmatmul.mubr.bf16.vlgmr.msra.gmra.mrb[0].mxu0 %v6021_v26  ;;  %v1299_v63 = vsel %vm5927_vm5, %v1297_v19, %v1298_v45  ;;  %v545_v4 = vor.u32 %v544_v14, %v541_v55  ;;  %v550_v41 = vrot.slane %v548_v59, 5  ;;  %v1305_v45 = vrot.slane %v5787_v35, 5  ;;  %v6084_v59 = vld [vmem:[%s5675_s6 + $0x9c] sm:$0xf] }
  0x5a   : > { %v527_v25 = vsel %vm5720_vm2, %v522_v49, %v526_v46  ;;  %4899 = vmatpush3.bf16.msra.mxu0 %v5400_v29  ;;  %v537_v57 = vsel %vm5720_vm2, %v532_v48, %v536_v42  ;;  %v6061_v46 = vcombine.low %v1296_v9, %v1299_v63  ;;  %v554_v49 = vrot.slane %v552_v8, 4  ;;  %v6072_v42 = vld [vmem:[%s5675_s6 + $0x98] sm:$0x1]  ;;  %v6087_v63 = vld [vmem:[%s5675_s6 + $0xa0] sm:$0xf] }
  0x5b   : > { %v6063_v17 = vcombine.low %v527_v25, %v537_v57  ;;  %v546_v61 = vrot.slane %v545_v4, 4  ;;  %4900 = vmatprep.subr.bf16.mxu0 %v5402_v31  ;;  %v563_v57 = vshrl.u32 %v6045_v24, 16  ;;  %v566_v9 = vshll.u32 %v6045_v24, 16 }
  0x5c   : > { %4870 = vmatprep.mubr.bf16.mxu0 %v6061_v46  ;;  %v555_v29 = vor.u32 %v554_v49, %v550_v41  ;;  %v572_v19 = vshll.u32 %v6048_v34, 16  ;;  %v1303_v35 = vsel %vm5927_vm5, %v4087_v44, %v1302_v20  ;;  %v1304_v55 = vrot.slane %v1302_v20, 4  ;;  %v6094_v20 = vld [vmem:[%s5675_s6 + $0xa4] sm:$0x1] }
  0x5d   : > { %7006 = vst [vmem:[#allocation12_spill] sm:$0xff] %v6063_v17  ;;  %4646 = vmatprep.mubr.bf16.mxu1 %v6063_v17  ;;  %v551_v30 = vsel %vm5720_vm2, %v546_v61, %v550_v41  ;;  %v576_v14 = vshrl.u32 %v6048_v34, 16  ;;  %v565_v48 = vrot.slane %v563_v57, 4  ;;  %v568_v8 = vrot.slane %v566_v9, 5 }
  0x5e   : > { %v556_v25 = vrot.slane %v555_v29, 4  ;;  %4901 = vmatpush3.bf16.msra.mxu0 %v5402_v31  ;;  %v574_v7 = vrot.slane %v572_v19, 5  ;;  %v1306_v4 = vsel %vm5927_vm5, %v1304_v55, %v1305_v45  ;;  %v582_v61 = vshll.u32 %v6072_v42, 16  ;;  %v5406_v45 = vld [vmem:[%s6974_s1 + $0x198] sm:$0xff]  }
  0x5f   : > { %v578_v49 = vrot.slane %v576_v14, 4  ;;  %v4088_v41 = vrot.slane %v5802_v58, 9  ;;  %4902 = vmatprep.subr.bf16.mxu0 %v5404_v22  ;;  %v6098_v44 = vcombine.low %v1303_v35, %v1306_v4  ;;  %v569_v29 = vor.u32 %v568_v8, %v565_v48 }
  0x60   : > { %v561_v31 = vsel %vm5720_vm2, %v556_v25, %v560_v21  ;;  %v1309_v57 = vrot.slane %v5816_v0, 5  ;;  %v584_v58 = vrot.slane %v582_v61, 5  ;;  %v1312_v55 = vrot.slane %v5819_v1, 5  ;;  %v6112_v25 = vld [vmem:[%s5675_s6 + $0xa8] sm:$0xf] }
  0x61   : > { %v6104_v9 = vcombine.low %v551_v30, %v561_v31  ;;  %v579_v19 = vor.u32 %v578_v49, %v574_v7  ;;  %4871 = vmatmul.mubr.bf16.gmra.mrb[4].mxu0 %v6098_v44  ;;  %v570_v14 = vrot.slane %v569_v29, 4  ;;  %v587_v0 = vshrl.u32 %v6084_v59, 16  ;;  %v5410_v30 = vld [vmem:[%s6974_s1 + $0x1a0] sm:$0xff]   ;;  %v6122_v49 = vld [vmem:[%s5675_s6 + $0xac] sm:$0xf] }
  0x62   : > { %v1310_v21 = vsel %vm5927_vm5, %v4088_v41, %v1309_v57  ;;  %v1311_v35 = vrot.slane %v1309_v57, 4  ;;  %v590_v1 = vshll.u32 %v6084_v59, 16  ;;  %v596_v8 = vshll.u32 %v6087_v63, 16  ;;  %4903 = vmatpush3.bf16.msra.mxu0 %v5404_v22 }
  0x63   : > { %7007 = vst [vmem:[#allocation13_spill] sm:$0xff] %v6104_v9  ;;  %4647 = vmatmul.mubr.bf16.gmra.mrb[20].mxu1 %v6104_v9  ;;  %v580_v48 = vrot.slane %v579_v19, 4  ;;  %v600_v4 = vshrl.u32 %v6087_v63, 16  ;;  %v575_v61 = vsel %vm5720_vm2, %v570_v14, %v574_v7  ;;  %v589_v31 = vrot.slane %v587_v0, 4  ;;  %4904 = vmatprep.subr.bf16.mxu0 %v5406_v45  ;;  %v6137_v14 = vld [vmem:[%s5675_s6 + $0xb0] sm:$0x1] }
  0x64   : > { %v1313_v41 = vsel %vm5927_vm5, %v1311_v35, %v1312_v55  ;;  %v606_v29 = vshll.u32 %v6094_v20, 16  ;;  %v592_v9 = vrot.slane %v590_v1, 5  ;;  %v598_v17 = vrot.slane %v596_v8, 5 }
  0x65   : > { %v585_v57 = vsel %vm5720_vm2, %v580_v48, %v584_v58  ;;  %v6131_v19 = vcombine.low %v1310_v21, %v1313_v41  ;;  %v602_v56 = vrot.slane %v600_v4, 4  ;;  %v4089_v7 = vrot.slane %v5833_v27, 9 }
  0x66   : > { %v6133_v22 = vcombine.low %v575_v61, %v585_v57  ;;  %v608_v18 = vrot.slane %v606_v29, 5  ;;  %v593_v55 = vor.u32 %v592_v9, %v589_v31  ;;  %v1316_v35 = vrot.slane %v5836_v28, 5  ;;  %4905 = vmatpush3.bf16.msra.mxu0 %v5406_v45  ;;  %v5414_v28 = vld [vmem:[%s6974_s1 + $0x1a8] sm:$0xff]  }
  0x67   : > { %4874 = vmatprep.mubr.bf16.mxu0 %v6131_v19  ;;  %v1319_v0 = vrot.slane %v5842_v33, 5  ;;  %v611_v58 = vshrl.u32 %v6112_v25, 16  ;;  %v603_v21 = vor.u32 %v602_v56, %v598_v17  ;;  %v614_v48 = vshll.u32 %v6112_v25, 16  ;;  %4906 = vmatprep.subr.bf16.mxu0 %v5410_v30 }
  0x68   : > { %7008 = vst [vmem:[#allocation14_spill] sm:$0xff] %v6133_v22  ;;  %4650 = vmatprep.mubr.bf16.mxu1 %v6133_v22  ;;  %v620_v1 = vshll.u32 %v6122_v49, 16  ;;  %v624_v27 = vshrl.u32 %v6122_v49, 16  ;;  %v594_v9 = vrot.slane %v593_v55, 4  ;;  %v1317_v33 = vsel %vm5927_vm5, %v4089_v7, %v1316_v35  ;;  %v6159_v22 = vld [vmem:[%s5675_s6 + $0xb4] sm:$0xf] }
  0x69   : > { %v1318_v45 = vrot.slane %v1316_v35, 4  ;;  %v613_v8 = vrot.slane %v611_v58, 4  ;;  %v604_v56 = vrot.slane %v603_v21, 4  ;;  %v616_v4 = vrot.slane %v614_v48, 5  ;;  %v6166_v48 = vld [vmem:[%s5675_s6 + $0xb8] sm:$0xf] }
  0x6a   : > { %v622_v61 = vrot.slane %v620_v1, 5  ;;  %v626_v41 = vrot.slane %v624_v27, 4  ;;  %v599_v31 = vsel %vm5720_vm2, %v594_v9, %v598_v17  ;;  %v630_v57 = vshll.u32 %v6137_v14, 16  ;;  %4907 = vmatpush3.bf16.msra.mxu0 %v5410_v30  ;;  %v5418_v17 = vld [vmem:[%s6974_s1 + $0x1b0] sm:$0xff]   ;;  %v6176_v27 = vld [vmem:[%s5675_s6 + $0xbc] sm:$0x1] }
  0x6b   : > { %v1320_v29 = vsel %vm5927_vm5, %v1318_v45, %v1319_v0  ;;  %v4090_v55 = vrot.slane %v5870_v5, 9  ;;  %v609_v7 = vsel %vm5720_vm2, %v604_v56, %v608_v18  ;;  %v617_v58 = vor.u32 %v616_v4, %v613_v8  ;;  %4908 = vmatprep.subr.bf16.mxu0 %v5414_v28  ;;  %v5422_v4 = vld [vmem:[%s6974_s1 + $0x1b8] sm:$0xff]  }
  0x6c   : > { %v6163_v35 = vcombine.low %v1317_v33, %v1320_v29  ;;  %v627_v21 = vor.u32 %v626_v41, %v622_v61  ;;  %v6171_v0 = vcombine.low %v599_v31, %v609_v7  ;;  %v632_v5 = vrot.slane %v630_v57, 5 }
  0x6d   : > { %v1323_v1 = vrot.slane %v5873_v6, 5  ;;  %v1326_v30 = vrot.slane %v5876_v10, 5  ;;  %v618_v18 = vrot.slane %v617_v58, 4  ;;  %v635_v33 = vshrl.u32 %v6159_v22, 16 }
  0x6e   : > { %7009 = vst [vmem:[#allocation15_spill] sm:$0xff] %v6171_v0  ;;  %4875 = vmatmul.mubr.bf16.gmra.mrb[8].mxu0 %v6163_v35  ;;  %v628_v9 = vrot.slane %v627_v21, 4  ;;  %v638_v45 = vshll.u32 %v6159_v22, 16  ;;  %4651 = vmatmul.mubr.bf16.gmra.mrb[24].mxu1 %v6171_v0  ;;  %v644_v6 = vshll.u32 %v6166_v48, 16  ;;  %v648_v10 = vshrl.u32 %v6166_v48, 16 }
  0x6f   : > { %v1324_v8 = vsel %vm5927_vm5, %v4090_v55, %v1323_v1  ;;  %v1325_v56 = vrot.slane %v1323_v1, 4  ;;  %4909 = vmatpush3.bf16.msra.mxu0 %v5414_v28  ;;  %v623_v41 = vsel %vm5720_vm2, %v618_v18, %v622_v61  ;;  %v637_v29 = vrot.slane %v635_v33, 4 }
  0x70   : > { %v633_v31 = vsel %vm5720_vm2, %v628_v9, %v632_v5  ;;  %v640_v57 = vrot.slane %v638_v45, 5  ;;  %4910 = vmatprep.subr.bf16.mxu0 %v5418_v17  ;;  %v646_v58 = vrot.slane %v644_v6, 5  ;;  %v650_v28 = vrot.slane %v648_v10, 4 }
  0x71   : > { %v6193_v55 = vcombine.low %v623_v41, %v633_v31  ;;  %v1327_v7 = vsel %vm5927_vm5, %v1325_v56, %v1326_v30  ;;  %v654_v0 = vshll.u32 %v6176_v27, 16  ;;  %v4091_v61 = vrot.slane %v5896_v32, 9  ;;  %v6208_v30 = vld [vmem:[%s6974_s1 + $0x1c0] sm:$0xff]  }
  0x72   : > { %v6197_v21 = vcombine.low %v1324_v8, %v1327_v7  ;;  %v641_v1 = vor.u32 %v640_v57, %v637_v29  ;;  %v651_v5 = vor.u32 %v650_v28, %v646_v58  ;;  %v1330_v18 = vrot.slane %v5904_v47, 5 }
  0x73   : > { %4654 = vmatprep.mubr.bf16.mxu1 %v6193_v55  ;;  %v1333_v9 = vrot.slane %v5910_v50, 5  ;;  %v4092_v33 = vrot.slane %v5938_v40, 9  ;;  %4911 = vmatpush3.bf16.msra.mxu0 %v5418_v17  ;;  %v656_v8 = vrot.slane %v654_v0, 5  ;;  %v1337_v56 = vrot.slane %v5945_v53, 5 }
  0x74   : > { %4878 = vmatprep.mubr.bf16.mxu0 %v6197_v21  ;;  %v642_v45 = vrot.slane %v641_v1, 4  ;;  %v1340_v6 = vrot.slane %v5953_v62, 5  ;;  %4912 = vmatprep.subr.bf16.mxu0 %v5422_v4  ;;  %v652_v10 = vrot.slane %v651_v5, 4  ;;  %v1331_v50 = vsel %vm5927_vm5, %v4091_v61, %v1330_v18 }
  0x75   : > { %v1332_v41 = vrot.slane %v1330_v18, 4  ;;  %v4093_v17 = vrot.slane %v5968_v2, 9  ;;  %v1338_v29 = vsel %vm5927_vm5, %v4092_v33, %v1337_v56  ;;  %v1339_v57 = vrot.slane %v1337_v56, 4 }
  0x76   : > { %v647_v31 = vsel %vm5720_vm2, %v642_v45, %v646_v58  ;;  %v1344_v0 = vrot.slane %v5982_v54, 5  ;;  %v657_v62 = vsel %vm5720_vm2, %v652_v10, %v656_v8  ;;  %v1347_v28 = vrot.slane %v5989_v16, 5 }
  0x77   : > { %v1334_v7 = vsel %vm5927_vm5, %v1332_v41, %v1333_v9  ;;  %v4094_v1 = vrot.slane %v6006_v38, 9  ;;  %4913 = vmatpush3.bf16.msra.mxu0 %v5422_v4  ;;  %v6227_v61 = vcombine.low %v647_v31, %v657_v62  ;;  %v1341_v5 = vsel %vm5927_vm5, %v1339_v57, %v1340_v6  ;;  %v5413_v57 = vld [vmem:[%s6974_s1 + $0x88] sm:$0xff]  }
  0x78   : > { %v6229_v58 = vcombine.low %v1331_v50, %v1334_v7  ;;  %4946 = vmatprep.subr.bf16.mxu0 %v6208_v30  ;;  %v6234_v18 = vcombine.low %v1338_v29, %v1341_v5  ;;  %v1346_v33 = vrot.slane %v1344_v0, 4  ;;  %v1351_v45 = vrot.slane %v6026_v3, 5 }
  0x79   : > { %v1354_v9 = vrot.slane %v6032_v36, 5  ;;  %4655 = vmatmul.mubr.bf16.gmra.mrb[28].mxu1 %v6227_v61  ;;  %v7010_v16 = vcombine.low %v5684_v12, %v5687_v13  ;;  %v1345_v4 = vsel %vm5927_vm5, %v4093_v17, %v1344_v0  ;;  %v1358_v6 = vrot.slane %v6048_v34, 5 }
  0x7a   : > { %4879 = vmatmul.mubr.bf16.gmra.mrb[12].mxu0 %v6229_v58  ;;  %v1348_v8 = vsel %vm5927_vm5, %v1346_v33, %v1347_v28  ;;  %v1353_v56 = vrot.slane %v1351_v45, 4  ;;  %v1365_v36 = vrot.slane %v6087_v63, 5  ;;  %v1352_v10 = vsel %vm5927_vm5, %v4094_v1, %v1351_v45 }
  0x7b   : > { %4674 = vmatprep.mubr.bf16.mxu1 %v7010_v16  ;;  %4882 = vmatprep.mubr.bf16.mxu0 %v6234_v18  ;;  %v6254_v13 = vcombine.low %v1345_v4, %v1348_v8  ;;  %v4095_v50 = vrot.slane %v6045_v24, 9  ;;  %v1361_v41 = vrot.slane %v6072_v42, 5  ;;  %v1360_v17 = vrot.slane %v1358_v6, 4 }
  0x7c   : > { %v1355_v12 = vsel %vm5927_vm5, %v1353_v56, %v1354_v9  ;;  %v4096_v31 = vrot.slane %v6084_v59, 9  ;;  %v1367_v0 = vrot.slane %v1365_v36, 4  ;;  %v1368_v62 = vrot.slane %v6094_v20, 5 }
  0x7d   : > { %v6259_v29 = vcombine.low %v1352_v10, %v1355_v12  ;;  %v1359_v7 = vsel %vm5927_vm5, %v4095_v50, %v1358_v6  ;;  %v1372_v42 = vrot.slane %v6122_v49, 5  ;;  %v6272_v28 = vcombine.low %v5896_v32, %v5904_v47  ;;  %v5417_v47 = vld [vmem:[%s6974_s1 + $0x90] sm:$0xff]   ;;  %v251_v6 = vld [vmem:[%s5675_s6 + $0xc8] sm:$0x1]  ;;  %v5462_v10 = vld [vmem:[%s5675_s6 + $0x40] sm:$0xf] }
  0x7e   : > { %v1362_v20 = vsel %vm5927_vm5, %v1360_v17, %v1361_v41  ;;  %v1366_v1 = vsel %vm5927_vm5, %v4096_v31, %v1365_v36  ;;  %v4097_v5 = vrot.slane %v6112_v25, 9  ;;  %v6283_v33 = vcombine.low %v5938_v40, %v5945_v53  ;;  %v5461_v36 = vld [vmem:[%s5675_s6 + $0x3c] sm:$0xf]  ;;  %v5463_v41 = vld [vmem:[%s5675_s6 + $0x48] sm:$0xf] }
  0x7f   : > { %v1369_v32 = vsel %vm5927_vm5, %v1367_v0, %v1368_v62  ;;  %v6294_v45 = vcombine.low %v5968_v2, %v5982_v54  ;;  %v6298_v40 = vcombine.low %v6006_v38, %v6026_v3  ;;  %v6302_v53 = vcombine.low %v6045_v24, %v6048_v34  ;;  %v6322_v24 = vld [vmem:[%s5675_s6 + $0xc4] sm:$0xf]  ;;  %v5464_v17 = vld [vmem:[%s5675_s6 + $0x4c] sm:$0xf] }
  0x80   : > { %v6306_v9 = vcombine.low %v6084_v59, %v6087_v63  ;;  %v6310_v16 = vcombine.low %v6112_v25, %v6122_v49  ;;  %v6312_v4 = vcombine.low %v1359_v7, %v1362_v20  ;;  %v1374_v2 = vrot.slane %v1372_v42, 4  ;;  %v5421_v25 = vld [vmem:[%s6974_s1 + $0x98] sm:$0xff]  }
  0x81   : > { %4675 = vmatmul.mubr.bf16.vlgmr.msra.gmra.mrb[0].mxu1 %v5733_v43  ;;  %v1375_v54 = vrot.slane %v6137_v14, 5  ;;  %v6317_v38 = vcombine.low %v6159_v22, %v6166_v48  ;;  %v6319_v3 = vcombine.low %v1366_v1, %v1369_v32  ;;  %v4098_v34 = vrot.slane %v6159_v22, 9  ;;  %v6336_v14 = vld [vmem:[%s5675_s6 + $0xc0] sm:$0xf] }
  0x82   : > { %4883 = vmatmul.mubr.bf16.gmra.mrb[16].mxu0 %v6254_v13  ;;  %4707 = vmatpush3.bf16.msra.mxu1 %v5997_v52  ;;  %v1379_v52 = vrot.slane %v6166_v48, 5  ;;  %v1382_v63 = vrot.slane %v6176_v27, 5  ;;  %v1373_v49 = vsel %vm5927_vm5, %v4097_v5, %v1372_v42  ;;  %v2259_v48 = vrot.slane %v6322_v24, 5  ;;  %v5425_v27 = vld [vmem:[%s6974_s1 + $0xa0] sm:$0xff]  }
  0x83   : > { %4678 = vmatprep.mubr.bf16.mxu1 %v5809_v60  ;;  %4886 = vmatprep.mubr.bf16.mxu0 %v6259_v29  ;;  %v1376_v22 = vsel %vm5927_vm5, %v1374_v2, %v1375_v54  ;;  %v6351_v12 = vcombine.low %v5461_v36, %v5462_v10  ;;  %v6357_v31 = vcombine.low %v5463_v41, %v5464_v17  ;;  %v1974_v0 = vshll.u32 %v6336_v14, 16  ;;  %v5429_v54 = vld [vmem:[%s6974_s1 + $0xa8] sm:$0xff]   ;;  %v5433_v36 = vld [vmem:[%s6974_s1 + $0xb0] sm:$0xff]   ;;  %v5466_v10 = vld [vmem:[%s5675_s6 + $0x58] sm:$0xf] }
  0x84   : > { %4708 = vmatprep.subr.bf16.mxu1 %v5413_v57  ;;  %v1381_v59 = vrot.slane %v1379_v52, 4  ;;  %v1380_v8 = vsel %vm5927_vm5, %v4098_v34, %v1379_v52  ;;  %v6353_v50 = vcombine.low %v1373_v49, %v1376_v22  ;;  %v1980_v62 = vshll.u32 %v6322_v24, 16 }
  0x85   : > { %v1984_v7 = vshrl.u32 %v6322_v24, 16  ;;  %v4189_v20 = vrot.slane %v6336_v14, 9  ;;  %v2261_v1 = vrot.slane %v2259_v48, 4  ;;  %v2262_v5 = vrot.slane %v251_v6, 5 }
  0x86   : > { %4709 = vmatpush3.bf16.msra.mxu1 %v5413_v57  ;;  %v1383_v56 = vsel %vm5927_vm5, %v1381_v59, %v1382_v63  ;;  %v1971_v57 = vshrl.u32 %v6336_v14, 16  ;;  %v1982_v52 = vrot.slane %v1980_v62, 5  ;;  %v1990_v63 = vshll.u32 %v251_v6, 16  ;;  %v5465_v6 = vld [vmem:[%s5675_s6 + $0x54] sm:$0xf]  ;;  %v5439_v62 = vld [vmem:[%s6974_s1 + $0xc0] sm:$0xff]  }
  0x87   : > { %4710 = vmatprep.subr.bf16.mxu1 %v5417_v47  ;;  %v6363_v42 = vcombine.low %v1380_v8, %v1383_v56  ;;  %v1986_v2 = vrot.slane %v1984_v7, 4  ;;  %v2263_v49 = vsel %vm5927_vm5, %v2261_v1, %v2262_v5  ;;  %v6382_v41 = vcombine.low %v5465_v6, %v5466_v10  ;;  %v5430_v7 = vld [vmem:[%s6974_s1 + $0x1c8] sm:$0xff]   ;;  %v5438_v1 = vld [vmem:[%s6974_s1 + $0x1d8] sm:$0xff]   ;;  %v5443_v6 = vld [vmem:[%s6974_s1 + $0xd0] sm:$0xff]  }
  0x88   : > { %v1973_v32 = vrot.slane %v1971_v57, 4  ;;  %v1992_v56 = vrot.slane %v1990_v63, 5  ;;  %v5446_v10 = vld [vmem:[%s6974_s1 + $0xd8] sm:$0xff]  }
  0x89   : > { %4679 = vmatmul.mubr.bf16.gmra.mrb[4].mxu1 %v5880_v11  ;;  %v1987_v59 = vor.u32 %v1986_v2, %v1982_v52  ;;  %v5469_v2 = vld [vmem:[%s5675_s6] sm:$0xf] }
  0x8a   : > { %4887 = vmatmul.mubr.bf16.gmra.mrb[20].mxu0 %v6312_v4  ;;  %4682 = vmatprep.mubr.bf16.mxu1 %v5884_v15 }
  0x8b   : > { %4890 = vmatprep.mubr.bf16.mxu0 %v6319_v3  ;;  %4711 = vmatpush3.bf16.msra.mxu1 %v5417_v47  ;;  %v1976_v47 = vrot.slane %v1974_v0, 5  ;;  %v1988_v8 = vrot.slane %v1987_v59, 4  ;;  %v5437_v0 = vld [vmem:[%s6974_s1 + $0xb8] sm:$0xff]   ;;  %v5442_v59 = vld [vmem:[%s6974_s1 + $0x1e8] sm:$0xff]  }
  0x8c   : > { %4712 = vmatprep.subr.bf16.mxu1 %v5421_v25 }
  0x8d   : > { %v1977_v34 = vor.u32 %v1976_v47, %v1973_v32  ;;  %v5440_v32 = vld [vmem:[%s6974_s1 + $0x1e0] sm:$0xff]   ;;  %v5468_v47 = vld [vmem:[%s5675_s6 + $0x8] sm:$0x1] }
  0x8f   : > { %4713 = vmatpush3.bf16.msra.mxu1 %v5421_v25  ;;  %v2260_v25 = vsel %vm5927_vm5, %v4189_v20, %v2259_v48  ;;  %v1978_v22 = vrot.slane %v1977_v34, 4  ;;  %v5434_v20 = vld [vmem:[%s6974_s1 + $0x1d0] sm:$0xff]  }
  0x90   : > { %4714 = vmatprep.subr.bf16.mxu1 %v5425_v27  ;;  %v6384_v17 = vcombine.low %v2260_v25, %v2263_v49  ;;  %v5444_v49 = vld [vmem:[%s6974_s1 + $0x1f0] sm:$0xff]  }
  0x91   : > { %4683 = vmatmul.mubr.bf16.gmra.mrb[8].mxu1 %v6351_v12  ;;  %v1983_v48 = vsel %vm5720_vm2, %v1978_v22, %v1982_v52  ;;  %v1277_v52 = vrot.slane %v5468_v47, 5  ;;  %v7013_v47 = vld [vmem:[#allocation7_spill] sm:$0xff] }
  0x92   : > { %4891 = vmatmul.mubr.bf16.gmra.mrb[24].mxu0 %v6353_v50  ;;  %4686 = vmatprep.mubr.bf16.mxu1 %v6357_v31 }
  0x93   : > { %4894 = vmatprep.mubr.bf16.mxu0 %v6363_v42  ;;  %4715 = vmatpush3.bf16.msra.mxu1 %v5425_v27  ;;  %v1993_v27 = vsel %vm5720_vm2, %v1988_v8, %v1992_v56  ;;  %v5448_v8 = vld [vmem:[%s6974_s1 + $0x1f8] sm:$0xff]   ;;  %v5450_v56 = vld [vmem:[%s6974_s1 + $0x200] sm:$0xff]  }
  0x94   : > { %4716 = vmatprep.subr.bf16.mxu1 %v5429_v54  ;;  %v6390_v57 = vcombine.low %v1983_v48, %v1993_v27  ;;  %v6471_v48 = vcombine.low %v6336_v14, %v6322_v24  ;;  %v5451_v27 = vld [vmem:[%s6974_s1 + $0xe8] sm:$0xff]   ;;  %v5453_v24 = vld [vmem:[%s6974_s1 + $0xf0] sm:$0xff]  }
  0x97   : > { %4717 = vmatpush3.bf16.msra.mxu1 %v5429_v54  ;;  %v4083_v54 = vrot.slane %v5469_v2, 9  ;;  %v5457_v2 = vld [vmem:[%s6974_s1 + $0x220] sm:$0xff]  }
  0x98   : > { %4718 = vmatprep.subr.bf16.mxu1 %v5433_v36 }
  0x99   : > { %4687 = vmatmul.mubr.bf16.gmra.mrb[12].mxu1 %v6382_v41 }
  0x9a   : > { %4895 = vmatmul.mubr.bf16.gmra.mrb[28].mxu0 %v6384_v17  ;;  %4690 = vmatprep.mubr.bf16.mxu1 %v6272_v28 }
  0x9b   : > { %4914 = vmatprep.mubr.bf16.mxu0 %v5809_v60  ;;  %4719 = vmatpush3.bf16.msra.mxu1 %v5433_v36  ;;  %v5441_v36 = vld [vmem:[%s6974_s1 + $0xc8] sm:$0xff]  }
  0x9c   : > { %4720 = vmatprep.subr.bf16.mxu1 %v5437_v0 }
  0x9f   : > { %4721 = vmatpush3.bf16.msra.mxu1 %v5437_v0  ;;  %v6481_v0 = vld [vmem:[%s5675_s6 + $0xcc] sm:$0xf] }
  0xa0   : > { %4754 = vmatprep.subr.bf16.mxu1 %v5439_v62 }
  0xa1   : > { %4691 = vmatmul.mubr.bf16.gmra.mrb[16].mxu1 %v6283_v33 }
  0xa2   : > { %4915 = vmatmul.mubr.bf16.vlgmr.msra.gmra.mrb[0].mxu0 %v5880_v11  ;;  %4694 = vmatprep.mubr.bf16.mxu1 %v6294_v45 }
  0xa3   : > { %4947 = vmatpush3.bf16.msra.mxu0 %v6208_v30  ;;  %4918 = vmatprep.mubr.bf16.mxu0 %v5884_v15  ;;  %v5467_v30 = vld [vmem:[%s5675_s6 + $0x4] sm:$0xf] }
  0xa4   : > { %4948 = vmatprep.subr.bf16.mxu0 %v5430_v7  ;;  %v1274_v5 = vrot.slane %v5467_v30, 5  ;;  %v7011_v30 = vld [vmem:[#allocation5_spill] sm:$0xff] }
  0xa6   : > { %v1276_v34 = vrot.slane %v1274_v5, 4  ;;  %v1275_v63 = vsel %vm5927_vm5, %v4083_v54, %v1274_v5  ;;  %v5454_v5 = vld [vmem:[%s6974_s1 + $0x210] sm:$0xff]   ;;  %v5458_v54 = vld [vmem:[%s6974_s1 + $0x228] sm:$0xff]  }
  0xa7   : > { %4949 = vmatpush3.bf16.msra.mxu0 %v5430_v7  ;;  %v5455_v7 = vld [vmem:[%s6974_s1 + $0xf8] sm:$0xff]  }
  0xa8   : > { %4950 = vmatprep.subr.bf16.mxu0 %v5434_v20  ;;  %v1278_v25 = vsel %vm5927_vm5, %v1276_v34, %v1277_v52  ;;  %v7014_v52 = vld [vmem:[#allocation8_spill] sm:$0xff]  ;;  %v7015_v34 = vld [vmem:[#allocation9_spill] sm:$0xff] }
  0xa9   : > { %4695 = vmatmul.mubr.bf16.gmra.mrb[20].mxu1 %v6298_v40  ;;  %v4115_v22 = vcombine.low %v1275_v63, %v1278_v25  ;;  %v5459_v63 = vld [vmem:[%s6974_s1 + $0x230] sm:$0xff]   ;;  %v5460_v25 = vld [vmem:[%s6974_s1 + $0x238] sm:$0xff]  }
  0xaa   : > { %4919 = vmatmul.mubr.bf16.gmra.mrb[4].mxu0 %v6351_v12  ;;  %4698 = vmatprep.mubr.bf16.mxu1 %v6302_v53 }
  0xab   : > { %4922 = vmatprep.mubr.bf16.mxu0 %v6357_v31  ;;  %4951 = vmatpush3.bf16.msra.mxu0 %v5434_v20  ;;  %v5452_v20 = vld [vmem:[%s6974_s1 + $0x208] sm:$0xff]  }
  0xac   : > { %4952 = vmatprep.subr.bf16.mxu0 %v5438_v1 }
  0xaf   : > { %4953 = vmatpush3.bf16.msra.mxu0 %v5438_v1  ;;  %v5470_v1 = vld [vmem:[%s6974_s1 + $0x100] sm:$0xff]  }
  0xb0   : > { %4954 = vmatprep.subr.bf16.mxu0 %v5440_v32 }
  0xb1   : > { %4699 = vmatmul.mubr.bf16.gmra.mrb[24].mxu1 %v6306_v9 }
  0xb2   : > { %4923 = vmatmul.mubr.bf16.gmra.mrb[8].mxu0 %v6382_v41  ;;  %4702 = vmatprep.mubr.bf16.mxu1 %v6310_v16 }
  0xb3   : > { %4926 = vmatprep.mubr.bf16.mxu0 %v6272_v28  ;;  %4955 = vmatpush3.bf16.msra.mxu0 %v5440_v32  ;;  %v5456_v32 = vld [vmem:[%s6974_s1 + $0x218] sm:$0xff]  }
  0xb4   : > { %4956 = vmatprep.subr.bf16.mxu0 %v5442_v59 }
  0xb7   : > { %4957 = vmatpush3.bf16.msra.mxu0 %v5442_v59  ;;  %v7016_v59 = vld [vmem:[#allocation10_spill] sm:$0xff] }
  0xb8   : > { %4958 = vmatprep.subr.bf16.mxu0 %v5444_v49 }
  0xb9   : > { %4703 = vmatmul.mubr.bf16.gmra.mrb[28].mxu1 %v6317_v38 }
  0xba   : > { %4927 = vmatmul.mubr.bf16.gmra.mrb[12].mxu0 %v6283_v33  ;;  %4722 = vmatprep.mubr.bf16.mxu1 %v4115_v22  ;;  %v7018_v22 = vld [vmem:[#allocation12_spill] sm:$0xff] }
  0xbb   : > { %4930 = vmatprep.mubr.bf16.mxu0 %v6294_v45  ;;  %4959 = vmatpush3.bf16.msra.mxu0 %v5444_v49  ;;  %v7017_v49 = vld [vmem:[#allocation11_spill] sm:$0xff] }
  0xbc   : > { %4960 = vmatprep.subr.bf16.mxu0 %v5448_v8 }
  0xbf   : > { %4961 = vmatpush3.bf16.msra.mxu0 %v5448_v8  ;;  %v7019_v8 = vld [vmem:[#allocation13_spill] sm:$0xff] }
  0xc0   : > { %4994 = vmatprep.subr.bf16.mxu0 %v5450_v56 }
  0xc1   : > { %4723 = vmatmul.mubr.bf16.vlgmr.msra.gmra.mrb[0].mxu1 %v5975_v39  ;;  %v5449_v39 = vld [vmem:[%s6974_s1 + $0xe0] sm:$0xff]  }
  0xc2   : > { %4931 = vmatmul.mubr.bf16.gmra.mrb[16].mxu0 %v6298_v40  ;;  %4755 = vmatpush3.bf16.msra.mxu1 %v5439_v62  ;;  %v6484_v62 = vld [vmem:[%s5675_s6 + $0xd0] sm:$0xf] }
  0xc3   : > { %4726 = vmatprep.mubr.bf16.mxu1 %v6021_v26  ;;  %4934 = vmatprep.mubr.bf16.mxu0 %v6302_v53  ;;  %v4231_v14 = vcombine.low %v6481_v0, %v6484_v62 }
  0xc4   : > { %4756 = vmatprep.subr.bf16.mxu1 %v5441_v36 }
  0xc6   : > { %4757 = vmatpush3.bf16.msra.mxu1 %v5441_v36  ;;  %v2794_v36 = vshll.u32 %v6481_v0, 16 }
  0xc7   : > { %4758 = vmatprep.subr.bf16.mxu1 %v5443_v6 }
  0xc9   : > { %4727 = vmatmul.mubr.bf16.gmra.mrb[4].mxu1 %v6061_v46 }
  0xca   : > { %4935 = vmatmul.mubr.bf16.gmra.mrb[20].mxu0 %v6306_v9  ;;  %4730 = vmatprep.mubr.bf16.mxu1 %v6098_v44 }
  0xcb   : > { %4938 = vmatprep.mubr.bf16.mxu0 %v6310_v16  ;;  %4759 = vmatpush3.bf16.msra.mxu1 %v5443_v6  ;;  %v2804_v6 = vshrl.u32 %v6484_v62, 16 }
  0xcc   : > { %4760 = vmatprep.subr.bf16.mxu1 %v5446_v10 }
  0xcf   : > { %4761 = vmatpush3.bf16.msra.mxu1 %v5446_v10  ;;  %v7020_v10 = vld [vmem:[#allocation14_spill] sm:$0xff] }
  0xd0   : > { %4762 = vmatprep.subr.bf16.mxu1 %v5449_v39 }
  0xd1   : > { %4731 = vmatmul.mubr.bf16.gmra.mrb[8].mxu1 %v6131_v19 }
  0xd2   : > { %4939 = vmatmul.mubr.bf16.gmra.mrb[24].mxu0 %v6317_v38  ;;  %4734 = vmatprep.mubr.bf16.mxu1 %v6163_v35 }
  0xd3   : > { %4942 = vmatprep.mubr.bf16.mxu0 %v6471_v48  ;;  %4763 = vmatpush3.bf16.msra.mxu1 %v5449_v39 }
  0xd4   : > { %4764 = vmatprep.subr.bf16.mxu1 %v5451_v27 }
  0xd7   : > { %4765 = vmatpush3.bf16.msra.mxu1 %v5451_v27  ;;  %v2796_v27 = vrot.slane %v2794_v36, 5 }
  0xd8   : > { %4766 = vmatprep.subr.bf16.mxu1 %v5453_v24 }
  0xd9   : > { %4735 = vmatmul.mubr.bf16.gmra.mrb[12].mxu1 %v6197_v21 }
  0xda   : > { %4943 = vmatmul.mubr.bf16.gmra.mrb[28].mxu0 %v4231_v14  ;;  %4738 = vmatprep.mubr.bf16.mxu1 %v6229_v58  ;;  %v2806_v14 = vrot.slane %v2804_v6, 4 }
  0xdb   : > { %4962 = vmatprep.mubr.bf16.mxu0 %v5797_v51  ;;  %4767 = vmatpush3.bf16.msra.mxu1 %v5453_v24  ;;  %v7012_v51 = vld [vmem:[#allocation6_spill] sm:$0xff] }
  0xdc   : > { %4768 = vmatprep.subr.bf16.mxu1 %v5455_v7 }
  0xdf   : > { %4769 = vmatpush3.bf16.msra.mxu1 %v5455_v7  ;;  %v5472_v7 = vld [vmem:[%s6974_s1 + $0x110] sm:$0xff]  }
  0xe0   : > { %5042 = vmatprep.subr.bf16.mxu1 %v5470_v1 }
  0xe1   : > { %4739 = vmatmul.mubr.bf16.gmra.mrb[16].mxu1 %v6234_v18 }
  0xe2   : > { %4963 = vmatmul.mubr.bf16.vlgmr.msra.gmra.mrb[0].mxu0 %v7011_v30  ;;  %4742 = vmatprep.mubr.bf16.mxu1 %v6254_v13 }
  0xe3   : > { %4995 = vmatpush3.bf16.msra.mxu0 %v5450_v56  ;;  %4966 = vmatprep.mubr.bf16.mxu0 %v7012_v51  ;;  %v2791_v56 = vshrl.u32 %v6481_v0, 16 }
  0xe4   : > { %4996 = vmatprep.subr.bf16.mxu0 %v5452_v20 }
  0xe5   : > { %v2793_v39 = vrot.slane %v2791_v56, 4 }
  0xe7   : > { %4997 = vmatpush3.bf16.msra.mxu0 %v5452_v20  ;;  %v7021_v20 = vld [vmem:[#allocation15_spill] sm:$0xff] }
  0xe8   : > { %4998 = vmatprep.subr.bf16.mxu0 %v5454_v5 }
  0xe9   : > { %4743 = vmatmul.mubr.bf16.gmra.mrb[20].mxu1 %v6259_v29 }
  0xea   : > { %4967 = vmatmul.mubr.bf16.gmra.mrb[4].mxu0 %v7013_v47  ;;  %4746 = vmatprep.mubr.bf16.mxu1 %v6312_v4 }
  0xeb   : > { %4970 = vmatprep.mubr.bf16.mxu0 %v7014_v52  ;;  %4999 = vmatpush3.bf16.msra.mxu0 %v5454_v5  ;;  %v5473_v5 = vld [vmem:[%s6974_s1 + $0x118] sm:$0xff]  }
  0xec   : > { %5000 = vmatprep.subr.bf16.mxu0 %v5456_v32 }
  0xef   : > { %5001 = vmatpush3.bf16.msra.mxu0 %v5456_v32 }
  0xf0   : > { %5002 = vmatprep.subr.bf16.mxu0 %v5457_v2 }
  0xf1   : > { %4747 = vmatmul.mubr.bf16.gmra.mrb[24].mxu1 %v6319_v3 }
  0xf2   : > { %4971 = vmatmul.mubr.bf16.gmra.mrb[8].mxu0 %v7015_v34  ;;  %4750 = vmatprep.mubr.bf16.mxu1 %v6353_v50 }
  0xf3   : > { %4974 = vmatprep.mubr.bf16.mxu0 %v7016_v59  ;;  %5003 = vmatpush3.bf16.msra.mxu0 %v5457_v2 }
  0xf4   : > { %5004 = vmatprep.subr.bf16.mxu0 %v5458_v54 }
  0xf7   : > { %5005 = vmatpush3.bf16.msra.mxu0 %v5458_v54  ;;  %v5475_v54 = vld [vmem:[%s6974_s1 + $0x128] sm:$0xff]  }
  0xf8   : > { %5006 = vmatprep.subr.bf16.mxu0 %v5459_v63 }
  0xf9   : > { %4751 = vmatmul.mubr.bf16.gmra.mrb[28].mxu1 %v6363_v42 }
  0xfa   : > { %4975 = vmatmul.mubr.bf16.gmra.mrb[12].mxu0 %v7017_v49  ;;  %4770 = vmatprep.mubr.bf16.mxu1 %v5733_v43  ;;  %v2800_v43 = vshll.u32 %v6484_v62, 16 }
  0xfb   : > { %4978 = vmatprep.mubr.bf16.mxu0 %v7018_v22  ;;  %5007 = vmatpush3.bf16.msra.mxu0 %v5459_v63 }
  0xfc   : > { %5008 = vmatprep.subr.bf16.mxu0 %v5460_v25  ;;  %v2802_v24 = vrot.slane %v2800_v43, 5 }
  0xfe   : > { %v2807_v30 = vor.u32 %v2806_v14, %v2802_v24 }
  0xff   : > { %5009 = vmatpush3.bf16.msra.mxu0 %v5460_v25 }
 0x100   : > { %v2808_v47 = vrot.slane %v2807_v30, 4 }
 0x101   : > { %4771 = vmatmul.mubr.bf16.vlgmr.msra.gmra.mrb[0].mxu1 %v5809_v60  ;;  %v5471_v60 = vld [vmem:[%s6974_s1 + $0x108] sm:$0xff]  }
 0x102   : > { %4979 = vmatmul.mubr.bf16.gmra.mrb[16].mxu0 %v7019_v8  ;;  %5050 = vmatpush3.bf16.msra.mxu1 %v5470_v1  ;;  %v2797_v1 = vor.u32 %v2796_v27, %v2793_v39 }
 0x103   : > { %4774 = vmatprep.mubr.bf16.mxu1 %v5880_v11  ;;  %4982 = vmatprep.mubr.bf16.mxu0 %v7020_v10  ;;  %v6552_v11 = vld [vmem:[%s5675_s6 + $0xd4] sm:$0x1] }
 0x104   : > { %5043 = vmatprep.subr.bf16.mxu1 %v5471_v60  ;;  %v2810_v51 = vshll.u32 %v6552_v11, 16  ;;  %v2798_v32 = vrot.slane %v2797_v1, 4 }
 0x106   : > { %5051 = vmatpush3.bf16.msra.mxu1 %v5471_v60  ;;  %v2812_v52 = vrot.slane %v2810_v51, 5 }
 0x107   : > { %5044 = vmatprep.subr.bf16.mxu1 %v5472_v7 }
 0x108   : > { %v2813_v2 = vsel %vm5720_vm2, %v2808_v47, %v2812_v52 }
 0x109   : > { %4775 = vmatmul.mubr.bf16.gmra.mrb[4].mxu1 %v5884_v15  ;;  %v5474_v15 = vld [vmem:[%s6974_s1 + $0x120] sm:$0xff]  }
 0x10a   : > { %4983 = vmatmul.mubr.bf16.gmra.mrb[20].mxu0 %v7021_v20  ;;  %4778 = vmatprep.mubr.bf16.mxu1 %v6351_v12  ;;  %v2803_v12 = vsel %vm5720_vm2, %v2798_v32, %v2802_v24 }
 0x10b   : > { %4986 = vmatprep.mubr.bf16.mxu0 %v6193_v55  ;;  %5052 = vmatpush3.bf16.msra.mxu1 %v5472_v7  ;;  %v4256_v34 = vcombine.low %v2803_v12, %v2813_v2 }
 0x10c   : > { %5045 = vmatprep.subr.bf16.mxu1 %v5473_v5 }
 0x10f   : > { %5053 = vmatpush3.bf16.msra.mxu1 %v5473_v5 }
 0x110   : > { %5046 = vmatprep.subr.bf16.mxu1 %v5474_v15 }
 0x111   : > { %4779 = vmatmul.mubr.bf16.gmra.mrb[8].mxu1 %v6357_v31  ;;  %v5476_v31 = vld [vmem:[%s6974_s1 + $0x130] sm:$0xff]  }
 0x112   : > { %4987 = vmatmul.mubr.bf16.gmra.mrb[24].mxu0 %v6227_v61  ;;  %4782 = vmatprep.mubr.bf16.mxu1 %v6382_v41 }
 0x113   : > { %4990 = vmatprep.mubr.bf16.mxu0 %v6390_v57  ;;  %5054 = vmatpush3.bf16.msra.mxu1 %v5474_v15 }
 0x114   : > { %5047 = vmatprep.subr.bf16.mxu1 %v5475_v54 }
 0x117   : > { %5055 = vmatpush3.bf16.msra.mxu1 %v5475_v54 }
 0x118   : > { %5048 = vmatprep.subr.bf16.mxu1 %v5476_v31 }
 0x119   : > { %4783 = vmatmul.mubr.bf16.gmra.mrb[12].mxu1 %v6272_v28 }
 0x11a   : > { %4991 = vmatmul.mubr.bf16.gmra.mrb[28].mxu0 %v4256_v34  ;;  %4786 = vmatprep.mubr.bf16.mxu1 %v6283_v33 }
 0x11b   : > { %5010 = vmatprep.mubr.bf16.mxu0 %v6021_v26  ;;  %5056 = vmatpush3.bf16.msra.mxu1 %v5476_v31  ;;  %v3079_v26 = vrot.slane %v6484_v62, 5 }
 0x11c   : > { %5049 = vmatprep.subr.bf16.mxu1 %v5477_v37 }
 0x11f   : > { %5057 = vmatpush3.bf16.msra.mxu1 %v5477_v37 }
 0x121   : > { %4787 = vmatmul.mubr.bf16.gmra.mrb[16].mxu1 %v6294_v45 }
 0x122   : > { %5011 = vmatmul.mubr.bf16.vlgmr.msra.gmra.mrb[0].mxu0 %v6061_v46  ;;  %4790 = vmatprep.mubr.bf16.mxu1 %v6298_v40  ;;  %v4265_v46 = vrot.slane %v6481_v0, 9 }
 0x123   : > { %5014 = vmatprep.mubr.bf16.mxu0 %v6098_v44  ;;  %v3081_v44 = vrot.slane %v3079_v26, 4 }
 0x129   : > { %4791 = vmatmul.mubr.bf16.gmra.mrb[20].mxu1 %v6302_v53 }
 0x12a   : > { %5015 = vmatmul.mubr.bf16.gmra.mrb[4].mxu0 %v6131_v19  ;;  %4794 = vmatprep.mubr.bf16.mxu1 %v6306_v9  ;;  %v3082_v19 = vrot.slane %v6552_v11, 5 }
 0x12b   : > { %5018 = vmatprep.mubr.bf16.mxu0 %v6163_v35  ;;  %v3080_v35 = vsel %vm5927_vm5, %v4265_v46, %v3079_v26 }
 0x131   : > { %4795 = vmatmul.mubr.bf16.gmra.mrb[24].mxu1 %v6310_v16 }
 0x132   : > { %5019 = vmatmul.mubr.bf16.gmra.mrb[8].mxu0 %v6197_v21  ;;  %4798 = vmatprep.mubr.bf16.mxu1 %v6317_v38  ;;  %v3083_v21 = vsel %vm5927_vm5, %v3081_v44, %v3082_v19 }
 0x133   : > { %5022 = vmatprep.mubr.bf16.mxu0 %v6229_v58  ;;  %v4282_v58 = vcombine.low %v3080_v35, %v3083_v21 }
 0x139   : > { %4799 = vmatmul.mubr.bf16.gmra.mrb[28].mxu1 %v6471_v48 }
 0x13a   : > { %5023 = vmatmul.mubr.bf16.gmra.mrb[12].mxu0 %v6234_v18  ;;  %4834 = vmatprep.mubr.bf16.mxu1 %v7017_v49 }
 0x13b   : > { %5026 = vmatprep.mubr.bf16.mxu0 %v6254_v13 }
 0x141   : > { %4835 = vmatmul.mubr.bf16.vlgmr.msra.gmra.mrb[16].mxu1 %v7018_v22 }
 0x142   : > { %5027 = vmatmul.mubr.bf16.gmra.mrb[16].mxu0 %v6259_v29  ;;  %4838 = vmatprep.mubr.bf16.mxu1 %v7019_v8 }
 0x143   : > { %5030 = vmatprep.mubr.bf16.mxu0 %v6312_v4 }
 0x149   : > { %4839 = vmatmul.mubr.bf16.gmra.mrb[20].mxu1 %v7020_v10 }
 0x14a   : > { %5031 = vmatmul.mubr.bf16.gmra.mrb[20].mxu0 %v6319_v3  ;;  %4842 = vmatprep.mubr.bf16.mxu1 %v7021_v20 }
 0x14b   : > { %5034 = vmatprep.mubr.bf16.mxu0 %v6353_v50 }
 0x151   : > { %4843 = vmatmul.mubr.bf16.gmra.mrb[24].mxu1 %v6193_v55  ;;  %v5558_v55 = vmov 0  }
 0x152   : > { %5035 = vmatmul.mubr.bf16.gmra.mrb[24].mxu0 %v6363_v42  ;;  %4846 = vmatprep.mubr.bf16.mxu1 %v6227_v61  ;;  %3475 = vst [vmem:[%s6626_s8] sm:$0xf] %v5558_v55  ;;  %3476 = vst [vmem:[%s6626_s8 + $0x4] sm:$0xf] %v5558_v55 }
 0x153   : > { %5038 = vmatprep.mubr.bf16.mxu0 %v6384_v17  ;;  %3477 = vst [vmem:[%s6626_s8 + $0x8] sm:$0x1] %v5558_v55  ;;  %4291 = vst [vmem:[%s6626_s8 + $0xcc] sm:$0xf] %v5558_v55 }
 0x154   : > { %4292 = vst [vmem:[%s6626_s8 + $0xd0] sm:$0xf] %v5558_v55  ;;  %4293 = vst [vmem:[%s6626_s8 + $0xd4] sm:$0x1] %v5558_v55 }
 0x159   : > { %4847 = vmatmul.mubr.bf16.gmra.mrb[28].mxu1 %v6390_v57 }
 0x15a   : > { %5039 = vmatmul.mubr.bf16.gmra.mrb[28].mxu0 %v4282_v58 }
 0x1d4   : > { %v4772_v23 = vpop.f32.mrb[0].mxu1 }
 0x1d5   : > { %v1811_v61 = vpop.f32.mrb[1].mxu1 }
 0x1d6   : > { %v4773_v18 = vpop.f32.mrb[2].mxu1 }
 0x1d7   : > { %v1814_v13 = vpop.f32.mrb[3].mxu1 }
 0x1dc   : > { %v4776_v29 = vpop.f32.mrb[4].mxu1 }
 0x1dd   : > { %v1827_v28 = vpop.f32.mrb[5].mxu1 }
 0x1de   : > { %v4777_v33 = vpop.f32.mrb[6].mxu1 }
 0x1df   : > { %v1830_v45 = vpop.f32.mrb[7].mxu1 }
 0x1e4   : > { %v6634_v40 = vpop.f32.mrb[8].mxu1 }
 0x1e5   : > { %v6636_v53 = vpop.f32.mrb[9].mxu1 }
 0x1e6   : > { %v6638_v9 = vpop.f32.mrb[10].mxu1 }
 0x1e7   : > { %v6640_v16 = vpop.f32.mrb[11].mxu1 }
 0x1ec   : > { %v6642_v4 = vpop.f32.mrb[12].mxu1 }
 0x1ed   : > { %v6644_v38 = vpop.f32.mrb[13].mxu1 }
 0x1ee   : > { %v6646_v3 = vpop.f32.mrb[14].mxu1 }
 0x1ef   : > { %v6648_v50 = vpop.f32.mrb[15].mxu1 }
 0x1f5   : > { %v5012_v42 = vpop.f32.mrb[0].mxu0 }
 0x1f6   : > { %v5058_v41 = vadd.f32 %v5012_v42, %v4772_v23  ;;  %v3187_v17 = vpop.f32.mrb[1].mxu0 }
 0x1f7   : > { %v5059_v57 = vadd.f32 %v3187_v17, %v1811_v61  ;;  %v5013_v48 = vpop.f32.mrb[2].mxu0 }
 0x1f8   : > { %v5060_v0 = vadd.f32 %v5013_v48, %v4773_v18  ;;  %v3190_v62 = vpop.f32.mrb[3].mxu0  ;;  %v3385_v56 = vmul.f32 %v5058_v41, %v5058_v41 }
 0x1f9   : > { %v5061_v59 = vadd.f32 %v3190_v62, %v1814_v13  ;;  %v3383_v25 = vmul.f32 %v5059_v57, %v5059_v57 }
 0x1fa   : > { %v3456_v63 = vpack.c.bf16 %v5060_v0, %v5058_v41  ;;  %v3386_v6 = vmul.f32 %v5060_v0, %v5060_v0 }
 0x1fb   : > { %v3346_v49 = vadd.f32 %v5061_v59, %v5059_v57  ;;  %v3384_v22 = vmul.f32 %v5061_v59, %v5061_v59  ;;  %v3455_v8 = vpack.c.bf16 %v5061_v59, %v5059_v57 }
 0x1fc   : > { %v3490_v36 = vshrl.u32 %v3456_v63, 16  ;;  %v3493_v14 = vshll.u32 %v3456_v63, 16 }
 0x1fd   : > { %v3347_v43 = vadd.f32 %v5058_v41, %v3346_v49  ;;  %v3415_v10 = vadd.f32 %v3384_v22, %v3383_v25  ;;  %v3483_v60 = vshrl.u32 %v3455_v8, 16  ;;  %v5016_v39 = vpop.f32.mrb[4].mxu0  ;;  %v3486_v7 = vshll.u32 %v3455_v8, 16 }
 0x1fe   : > { %v3492_v24 = vrot.slane %v3490_v36, 7  ;;  %v5062_v11 = vadd.f32 %v5016_v39, %v4776_v29  ;;  %v3203_v20 = vpop.f32.mrb[5].mxu0 }
 0x1ff   : > { %v3416_v1 = vadd.f32 %v3415_v10, %v3385_v56  ;;  %v3485_v30 = vrot.slane %v3483_v60, 7  ;;  %v5063_v51 = vadd.f32 %v3203_v20, %v1827_v28  ;;  %v3348_v5 = vadd.f32 %v5060_v0, %v3347_v43  ;;  %v5017_v32 = vpop.f32.mrb[6].mxu0 }
 0x200   : > { %v3495_v47 = vor.u32 %v3493_v14, %v3492_v24  ;;  %v3389_v52 = vmul.f32 %v5062_v11, %v5062_v11  ;;  %v5064_v15 = vadd.f32 %v5017_v32, %v4777_v33  ;;  %v3206_v12 = vpop.f32.mrb[7].mxu0  ;;  %v6657_v2 = vsel %vm6651_vm8, %v3492_v24, 0 }
 0x201   : > { %v3488_v54 = vor.u32 %v3486_v7, %v3485_v30  ;;  %v3349_v34 = vadd.f32 %v5063_v51, %v3348_v5  ;;  %v3387_v31 = vmul.f32 %v5063_v51, %v5063_v51  ;;  %v3417_v37 = vadd.f32 %v3416_v1, %v3386_v6 }
 0x202   : > { %v3390_v26 = vmul.f32 %v5064_v15, %v5064_v15  ;;  %v3458_v46 = vpack.c.bf16 %v5064_v15, %v5062_v11  ;;  %v5065_v44 = vadd.f32 %v3206_v12, %v1830_v45  ;;  %v3630_v19 = vsel %vm6651_vm8, 0, %v3495_v47 }
 0x203   : > { %v3418_v35 = vadd.f32 %v3417_v37, %v3387_v31  ;;  %v3629_v21 = vsel %vm6651_vm8, 0, %v3488_v54  ;;  %v3645_v58 = vsel %vm6651_vm8, %v3485_v30, 0  ;;  %v4297_v55 = vcombine.low %v3630_v19, %v3630_v19 }
 0x204   : > { %v3504_v23 = vshrl.u32 %v3458_v46, 16  ;;  %v3507_v61 = vshll.u32 %v3458_v46, 16  ;;  %v3350_v18 = vadd.f32 %v5065_v44, %v3349_v34  ;;  %v3388_v13 = vmul.f32 %v5065_v44, %v5065_v44 }
 0x205   : > { %v3457_v29 = vpack.c.bf16 %v5065_v44, %v5063_v51  ;;  %v5020_v28 = vpop.f32.mrb[8].mxu0  ;;  %v4294_v33 = vcombine.low %v3629_v21, %v3629_v21  ;;  %v4295_v45 = vcombine.high %v3629_v21, %v3629_v21  ;;  %v4296_v42 = vcombine.low %v3645_v58, %v3645_v58  ;;  %4345 = vst [vmem:[%s6626_s8 + $0x18] sm:$0xf] %v4297_v55 }
 0x206   : > { %v3506_v41 = vrot.slane %v3504_v23, 7  ;;  %v3351_v17 = vadd.f32 %v5062_v11, %v3350_v18  ;;  %v3419_v57 = vadd.f32 %v3418_v35, %v3388_v13  ;;  %v5066_v48 = vadd.f32 %v5020_v28, %v6634_v40  ;;  %v3219_v0 = vpop.f32.mrb[9].mxu0 }
 0x207   : > { %v3497_v62 = vshrl.u32 %v3457_v29, 16  ;;  %v3500_v59 = vshll.u32 %v3457_v29, 16  ;;  %v5067_v63 = vadd.f32 %v3219_v0, %v6636_v53  ;;  %v5021_v25 = vpop.f32.mrb[10].mxu0  ;;  %v4298_v49 = vcombine.high %v3630_v19, %v3630_v19  ;;  %4342 = vst [vmem:[%s6626_s8 + $0xc] sm:$0xf] %v4294_v33 }
 0x208   : > { %4343 = vst [vmem:[%s6626_s8 + $0x10] sm:$0xf] %v4295_v45  ;;  %4344 = vst [vmem:[%s6626_s8 + $0x14] sm:$0x1] %v4296_v42  ;;  %v3509_v22 = vor.u32 %v3507_v61, %v3506_v41  ;;  %v3420_v8 = vadd.f32 %v3419_v57, %v3389_v52  ;;  %v3393_v56 = vmul.f32 %v5066_v48, %v5066_v48  ;;  %v3222_v6 = vpop.f32.mrb[11].mxu0  ;;  %v6680_v14 = vsel %vm6651_vm8, %v3506_v41, 0 }
 0x209   : > { %v3352_v36 = vadd.f32 %v5064_v15, %v3351_v17  ;;  %v3499_v43 = vrot.slane %v3497_v62, 7  ;;  %v3391_v10 = vmul.f32 %v5067_v63, %v5067_v63  ;;  %v5068_v40 = vadd.f32 %v5021_v25, %v6638_v9  ;;  %4346 = vst [vmem:[%s6626_s8 + $0x1c] sm:$0xf] %v4298_v49 }
 0x20a   : > { %v5069_v60 = vadd.f32 %v3222_v6, %v6640_v16  ;;  %v3421_v24 = vadd.f32 %v3420_v8, %v3390_v26  ;;  %v6676_v53 = vsel %vm6651_vm8, 0, %v3509_v22  ;;  %v4299_v15 = vcombine.low %v6657_v2, %v6657_v2 }
 0x20b   : > { %v3353_v39 = vadd.f32 %v5067_v63, %v3352_v36  ;;  %v3502_v7 = vor.u32 %v3500_v59, %v3499_v43  ;;  %v3394_v11 = vmul.f32 %v5068_v40, %v5068_v40  ;;  %v3460_v20 = vpack.c.bf16 %v5068_v40, %v5066_v48 }
 0x20c   : > { %v3392_v1 = vmul.f32 %v5069_v60, %v5069_v60  ;;  %v3422_v30 = vadd.f32 %v3421_v24, %v3391_v10  ;;  %v3459_v9 = vpack.c.bf16 %v5069_v60, %v5067_v63  ;;  %v6684_v16 = vsel %vm6651_vm8, %v3499_v43, 0  ;;  %4347 = vst [vmem:[%s6626_s8 + $0x20] sm:$0x1] %v4299_v15 }
 0x20d   : > { %v3354_v51 = vadd.f32 %v5069_v60, %v3353_v39  ;;  %v3518_v5 = vshrl.u32 %v3460_v20, 16  ;;  %v3521_v32 = vshll.u32 %v3460_v20, 16  ;;  %v5024_v47 = vpop.f32.mrb[12].mxu0  ;;  %v6688_v52 = vsel %vm6651_vm8, 0, %v3502_v7 }
 0x20e   : > { %v3423_v54 = vadd.f32 %v3422_v30, %v3392_v1  ;;  %v3511_v34 = vshrl.u32 %v3459_v9, 16  ;;  %v3514_v31 = vshll.u32 %v3459_v9, 16  ;;  %v3235_v37 = vpop.f32.mrb[13].mxu0  ;;  %v5070_v46 = vadd.f32 %v5024_v47, %v6642_v4 }
 0x20f   : > { %v3355_v12 = vadd.f32 %v5066_v48, %v3354_v51  ;;  %v3520_v26 = vrot.slane %v3518_v5, 7  ;;  %v5071_v44 = vadd.f32 %v3235_v37, %v6644_v38  ;;  %v5025_v19 = vpop.f32.mrb[14].mxu0  ;;  %v4300_v35 = vcombine.low %v6688_v52, %v6688_v52 }
 0x210   : > { %v3424_v21 = vadd.f32 %v3423_v54, %v3393_v56  ;;  %v3513_v58 = vrot.slane %v3511_v34, 7  ;;  %v5072_v2 = vadd.f32 %v5025_v19, %v6646_v3  ;;  %v3238_v23 = vpop.f32.mrb[15].mxu0  ;;  %v3397_v18 = vmul.f32 %v5070_v46, %v5070_v46 }
 0x211   : > { %v3356_v55 = vadd.f32 %v5068_v40, %v3355_v12  ;;  %v3523_v61 = vor.u32 %v3521_v32, %v3520_v26  ;;  %v3395_v13 = vmul.f32 %v5071_v44, %v5071_v44  ;;  %v5073_v29 = vadd.f32 %v3238_v23, %v6648_v50  ;;  %4348 = vst [vmem:[%s6626_s8 + $0x24] sm:$0xf] %v4300_v35 }
 0x212   : > { %v3516_v4 = vor.u32 %v3514_v31, %v3513_v58  ;;  %v3425_v38 = vadd.f32 %v3424_v21, %v3394_v11  ;;  %v3398_v33 = vmul.f32 %v5072_v2, %v5072_v2  ;;  %v3462_v45 = vpack.c.bf16 %v5072_v2, %v5070_v46 }
 0x213   : > { %v3357_v28 = vadd.f32 %v5071_v44, %v3356_v55  ;;  %v3396_v42 = vmul.f32 %v5073_v29, %v5073_v29  ;;  %v3461_v41 = vpack.c.bf16 %v5073_v29, %v5071_v44  ;;  %v6702_v17 = vsel %vm6651_vm8, 0, %v3523_v61 }
 0x214   : > { %v3426_v57 = vadd.f32 %v3425_v38, %v3395_v13  ;;  %v6706_v48 = vsel %vm6651_vm8, 0, %v3516_v4  ;;  %v6710_v50 = vsel %vm6651_vm8, %v3513_v58, 0  ;;  %v3532_v0 = vshrl.u32 %v3462_v45, 16  ;;  %v4836_v25 = vpop.f32.mrb[16].mxu1 }
 0x215   : > { %v3358_v3 = vadd.f32 %v5073_v29, %v3357_v28  ;;  %v3535_v62 = vshll.u32 %v3462_v45, 16  ;;  %v3525_v59 = vshrl.u32 %v3461_v41, 16  ;;  %v3528_v63 = vshll.u32 %v3461_v41, 16  ;;  %v5028_v49 = vpop.f32.mrb[16].mxu0  ;;  %v2161_v36 = vpop.f32.mrb[17].mxu1 }
 0x216   : > { %v3427_v8 = vadd.f32 %v3426_v57, %v3396_v42  ;;  %v5074_v56 = vadd.f32 %v5028_v49, %v4836_v25  ;;  %v3251_v6 = vpop.f32.mrb[17].mxu0  ;;  %v6714_v43 = vsel %vm6651_vm8, %v3520_v26, 0  ;;  %v3534_v10 = vrot.slane %v3532_v0, 7  ;;  %v4837_v39 = vpop.f32.mrb[18].mxu1 }
 0x217   : > { %v3359_v22 = vadd.f32 %v5070_v46, %v3358_v3  ;;  %v3527_v40 = vrot.slane %v3525_v59, 7  ;;  %v5075_v60 = vadd.f32 %v3251_v6, %v2161_v36  ;;  %v5029_v24 = vpop.f32.mrb[18].mxu0  ;;  %v4301_v7 = vcombine.high %v6688_v52, %v6688_v52  ;;  %v2164_v51 = vpop.f32.mrb[19].mxu1 }
 0x218   : > { %v3428_v11 = vadd.f32 %v3427_v8, %v3397_v18  ;;  %v3401_v20 = vmul.f32 %v5074_v56, %v5074_v56  ;;  %v5076_v30 = vadd.f32 %v5029_v24, %v4837_v39  ;;  %v3254_v9 = vpop.f32.mrb[19].mxu0  ;;  %v3537_v5 = vor.u32 %v3535_v62, %v3534_v10 }
 0x219   : > { %v3360_v1 = vadd.f32 %v5072_v2, %v3359_v22  ;;  %v3530_v32 = vor.u32 %v3528_v63, %v3527_v40  ;;  %v3399_v47 = vmul.f32 %v5075_v60, %v5075_v60  ;;  %v5077_v15 = vadd.f32 %v3254_v9, %v2164_v51  ;;  %4349 = vst [vmem:[%s6626_s8 + $0x28] sm:$0xf] %v4301_v7 }
 0x21a   : > { %v3429_v54 = vadd.f32 %v3428_v11, %v3398_v33  ;;  %v3402_v34 = vmul.f32 %v5076_v30, %v5076_v30  ;;  %v3464_v31 = vpack.c.bf16 %v5076_v30, %v5074_v56  ;;  %v6725_v46 = vsel %vm6651_vm8, 0, %v3537_v5 }
 0x21b   : > { %v3361_v12 = vadd.f32 %v5075_v60, %v3360_v1  ;;  %v3400_v37 = vmul.f32 %v5077_v15, %v5077_v15  ;;  %v3463_v26 = vpack.c.bf16 %v5077_v15, %v5075_v60  ;;  %v6721_v52 = vsel %vm6651_vm8, 0, %v3530_v32 }
 0x21c   : > { %v3430_v44 = vadd.f32 %v3429_v54, %v3399_v47  ;;  %v3546_v19 = vshrl.u32 %v3464_v31, 16  ;;  %v3549_v35 = vshll.u32 %v3464_v31, 16  ;;  %v4840_v2 = vpop.f32.mrb[20].mxu1  ;;  %v6729_v61 = vsel %vm6651_vm8, %v3527_v40, 0 }
 0x21d   : > { %v3362_v21 = vadd.f32 %v5077_v15, %v3361_v12  ;;  %v3539_v58 = vshrl.u32 %v3463_v26, 16  ;;  %v3542_v55 = vshll.u32 %v3463_v26, 16  ;;  %v5032_v23 = vpop.f32.mrb[20].mxu0  ;;  %v6733_v18 = vsel %vm6651_vm8, %v3534_v10, 0  ;;  %v2177_v38 = vpop.f32.mrb[21].mxu1 }
 0x21e   : > { %v3548_v13 = vrot.slane %v3546_v19, 7  ;;  %v3431_v4 = vadd.f32 %v3430_v44, %v3400_v37  ;;  %v5078_v28 = vadd.f32 %v5032_v23, %v4840_v2  ;;  %v3267_v33 = vpop.f32.mrb[21].mxu0  ;;  %v4841_v41 = vpop.f32.mrb[22].mxu1  ;;  %v4302_v3 = vcombine.low %v6684_v16, %v6684_v16 }
 0x21f   : > { %v3363_v29 = vadd.f32 %v5074_v56, %v3362_v21  ;;  %v3541_v45 = vrot.slane %v3539_v58, 7  ;;  %v5079_v42 = vadd.f32 %v3267_v33, %v2177_v38  ;;  %v5033_v57 = vpop.f32.mrb[22].mxu0  ;;  %v4303_v0 = vcombine.low %v6676_v53, %v6676_v53  ;;  %v2180_v49 = vpop.f32.mrb[23].mxu1 }
 0x220   : > { %v3551_v62 = vor.u32 %v3549_v35, %v3548_v13  ;;  %v3432_v59 = vadd.f32 %v3431_v4, %v3401_v20  ;;  %v3405_v63 = vmul.f32 %v5078_v28, %v5078_v28  ;;  %v3270_v22 = vpop.f32.mrb[23].mxu0  ;;  %v5080_v36 = vadd.f32 %v5033_v57, %v4841_v41  ;;  %4350 = vst [vmem:[%s6626_s8 + $0x2c] sm:$0x1] %v4302_v3 }
 0x221   : > { %v3364_v25 = vadd.f32 %v5076_v30, %v3363_v29  ;;  %v3544_v8 = vor.u32 %v3542_v55, %v3541_v45  ;;  %v3403_v56 = vmul.f32 %v5079_v42, %v5079_v42  ;;  %v5081_v6 = vadd.f32 %v3270_v22, %v2180_v49  ;;  %4351 = vst [vmem:[%s6626_s8 + $0x30] sm:$0xf] %v4303_v0 }
 0x222   : > { %v3433_v40 = vadd.f32 %v3432_v59, %v3402_v34  ;;  %v6743_v16 = vsel %vm6651_vm8, 0, %v3551_v62  ;;  %v6747_v60 = vsel %vm6651_vm8, %v3541_v45, 0  ;;  %v3406_v39 = vmul.f32 %v5080_v36, %v5080_v36 }
 0x223   : > { %v3365_v10 = vadd.f32 %v5079_v42, %v3364_v25  ;;  %v3466_v24 = vpack.c.bf16 %v5080_v36, %v5078_v28  ;;  %v3404_v7 = vmul.f32 %v5081_v6, %v5081_v6  ;;  %v3465_v11 = vpack.c.bf16 %v5081_v6, %v5079_v42 }
 0x224   : > { %v3434_v20 = vadd.f32 %v3433_v40, %v3403_v56  ;;  %v6751_v30 = vsel %vm6651_vm8, 0, %v3544_v8  ;;  %v6755_v51 = vsel %vm6651_vm8, %v3548_v13, 0  ;;  %v4844_v15 = vpop.f32.mrb[24].mxu1  ;;  %v4304_v44 = vcombine.high %v6676_v53, %v6676_v53 }
 0x225   : > { %v3366_v1 = vadd.f32 %v5081_v6, %v3365_v10  ;;  %v3560_v9 = vshrl.u32 %v3466_v24, 16  ;;  %v3563_v5 = vshll.u32 %v3466_v24, 16  ;;  %v3553_v32 = vshrl.u32 %v3465_v11, 16  ;;  %v5036_v12 = vpop.f32.mrb[24].mxu0  ;;  %v2193_v37 = vpop.f32.mrb[25].mxu1 }
 0x226   : > { %v3556_v47 = vshll.u32 %v3465_v11, 16  ;;  %v3435_v34 = vadd.f32 %v3434_v20, %v3404_v7  ;;  %v5082_v31 = vadd.f32 %v5036_v12, %v4844_v15  ;;  %v3283_v26 = vpop.f32.mrb[25].mxu0  ;;  %v4845_v58 = vpop.f32.mrb[26].mxu1  ;;  %v4305_v2 = vcombine.low %v6680_v14, %v6680_v14  ;;  %4352 = vst [vmem:[%s6626_s8 + $0x34] sm:$0xf] %v4304_v44 }
 0x227   : > { %v3367_v54 = vadd.f32 %v5078_v28, %v3366_v1  ;;  %v3562_v19 = vrot.slane %v3560_v9, 7  ;;  %v3555_v35 = vrot.slane %v3553_v32, 7  ;;  %v5083_v21 = vadd.f32 %v3283_v26, %v2193_v37  ;;  %v5037_v55 = vpop.f32.mrb[26].mxu0  ;;  %v2196_v28 = vpop.f32.mrb[27].mxu1 }
 0x228   : > { %v3436_v23 = vadd.f32 %v3435_v34, %v3405_v63  ;;  %v3409_v13 = vmul.f32 %v5082_v31, %v5082_v31  ;;  %v5084_v4 = vadd.f32 %v5037_v55, %v4845_v58  ;;  %v3286_v38 = vpop.f32.mrb[27].mxu0  ;;  %4353 = vst [vmem:[%s6626_s8 + $0x38] sm:$0x1] %v4305_v2  ;;  %v4306_v12 = vcombine.low %v6706_v48, %v6706_v48 }
 0x229   : > { %v3368_v29 = vadd.f32 %v5080_v36, %v3367_v54  ;;  %v3565_v33 = vor.u32 %v3563_v5, %v3562_v19  ;;  %v3558_v45 = vor.u32 %v3556_v47, %v3555_v35  ;;  %v3407_v42 = vmul.f32 %v5083_v21, %v5083_v21 }
 0x22a   : > { %v5085_v53 = vadd.f32 %v3286_v38, %v2196_v28  ;;  %v3437_v57 = vadd.f32 %v3436_v23, %v3406_v39  ;;  %v3410_v3 = vmul.f32 %v5084_v4, %v5084_v4  ;;  %v3468_v0 = vpack.c.bf16 %v5084_v4, %v5082_v31  ;;  %4354 = vst [vmem:[%s6626_s8 + $0x3c] sm:$0xf] %v4306_v12 }
 0x22b   : > { %v3369_v41 = vadd.f32 %v5083_v21, %v3368_v29  ;;  %v6765_v14 = vsel %vm6651_vm8, 0, %v3558_v45  ;;  %v6769_v63 = vsel %vm6651_vm8, 0, %v3565_v33  ;;  %v6773_v40 = vsel %vm6651_vm8, %v3555_v35, 0 }
 0x22c   : > { %v3408_v62 = vmul.f32 %v5085_v53, %v5085_v53  ;;  %v3467_v59 = vpack.c.bf16 %v5085_v53, %v5083_v21  ;;  %v3438_v25 = vadd.f32 %v3437_v57, %v3407_v42  ;;  %v3574_v49 = vshrl.u32 %v3468_v0, 16  ;;  %v4848_v6 = vpop.f32.mrb[28].mxu1 }
 0x22d   : > { %v3577_v22 = vshll.u32 %v3468_v0, 16  ;;  %v3370_v8 = vadd.f32 %v5085_v53, %v3369_v41  ;;  %v5040_v10 = vpop.f32.mrb[28].mxu0  ;;  %v6777_v39 = vsel %vm6651_vm8, %v3562_v19, 0  ;;  %v2209_v1 = vpop.f32.mrb[29].mxu1  ;;  %v4307_v54 = vcombine.high %v6706_v48, %v6706_v48 }
 0x22e   : > { %v3567_v56 = vshrl.u32 %v3467_v59, 16  ;;  %v3570_v36 = vshll.u32 %v3467_v59, 16  ;;  %v3576_v24 = vrot.slane %v3574_v49, 7  ;;  %v3439_v11 = vadd.f32 %v3438_v25, %v3408_v62  ;;  %v3299_v9 = vpop.f32.mrb[29].mxu0  ;;  %v4849_v47 = vpop.f32.mrb[30].mxu1 }
 0x22f   : > { %v3371_v7 = vadd.f32 %v5082_v31, %v3370_v8  ;;  %v5086_v20 = vadd.f32 %v5040_v10, %v4848_v6  ;;  %v5087_v32 = vadd.f32 %v3299_v9, %v2209_v1  ;;  %v5041_v15 = vpop.f32.mrb[30].mxu0  ;;  %v2212_v44 = vpop.f32.mrb[31].mxu1  ;;  %4355 = vst [vmem:[%s6626_s8 + $0x40] sm:$0xf] %v4307_v54  ;;  %v4308_v25 = vcombine.low %v6710_v50, %v6710_v50 }
 0x230   : > { %v3569_v5 = vrot.slane %v3567_v56, 7  ;;  %v3579_v34 = vor.u32 %v3577_v22, %v3576_v24  ;;  %v3440_v37 = vadd.f32 %v3439_v11, %v3409_v13  ;;  %v3302_v19 = vpop.f32.mrb[31].mxu0  ;;  %v5088_v58 = vadd.f32 %v5041_v15, %v4849_v47 }
 0x231   : > { %v3413_v26 = vmul.f32 %v5086_v20, %v5086_v20  ;;  %v3372_v31 = vadd.f32 %v5084_v4, %v3371_v7  ;;  %v3411_v21 = vmul.f32 %v5087_v32, %v5087_v32  ;;  %v5089_v55 = vadd.f32 %v3302_v19, %v2212_v44  ;;  %4356 = vst [vmem:[%s6626_s8 + $0x44] sm:$0x1] %v4308_v25 }
 0x232   : > { %v3572_v35 = vor.u32 %v3570_v36, %v3569_v5  ;;  %v3441_v23 = vadd.f32 %v3440_v37, %v3410_v3  ;;  %v6787_v29 = vsel %vm6651_vm8, 0, %v3579_v34  ;;  %v6791_v48 = vsel %vm6651_vm8, %v3569_v5, 0 }
 0x233   : > { %v3373_v2 = vadd.f32 %v5087_v32, %v3372_v31  ;;  %v3414_v13 = vmul.f32 %v5088_v58, %v5088_v58  ;;  %v3470_v4 = vpack.c.bf16 %v5088_v58, %v5086_v20  ;;  %v3412_v28 = vmul.f32 %v5089_v55, %v5089_v55 }
 0x234   : > { %v3469_v38 = vpack.c.bf16 %v5089_v55, %v5087_v32  ;;  %v3442_v33 = vadd.f32 %v3441_v23, %v3411_v21  ;;  %v6795_v42 = vsel %vm6651_vm8, 0, %v3572_v35  ;;  %v6799_v53 = vsel %vm6651_vm8, %v3576_v24, 0 }
 0x235   : > { %v3374_v45 = vadd.f32 %v5089_v55, %v3373_v2  ;;  %v3588_v41 = vshrl.u32 %v3470_v4, 16  ;;  %v3591_v57 = vshll.u32 %v3470_v4, 16  ;;  %v4309_v49 = vcombine.low %v6702_v17, %v6702_v17 }
 0x236   : > { %v3581_v3 = vshrl.u32 %v3469_v38, 16  ;;  %v3584_v0 = vshll.u32 %v3469_v38, 16  ;;  %v3443_v59 = vadd.f32 %v3442_v33, %v3412_v28  ;;  %v4310_v56 = vcombine.high %v6702_v17, %v6702_v17 }
 0x237   : > { %v3375_v62 = vadd.f32 %v5086_v20, %v3374_v45  ;;  %v3590_v22 = vrot.slane %v3588_v41, 7  ;;  %v4311_v36 = vcombine.low %v6714_v43, %v6714_v43  ;;  %v4312_v50 = vcombine.low %v6721_v52, %v6721_v52  ;;  %4357 = vst [vmem:[%s6626_s8 + $0x48] sm:$0xf] %v4309_v49 }
 0x238   : > { %v3583_v8 = vrot.slane %v3581_v3, 7  ;;  %v3444_v10 = vadd.f32 %v3443_v59, %v3413_v26  ;;  %v4313_v24 = vcombine.high %v6721_v52, %v6721_v52  ;;  %4358 = vst [vmem:[%s6626_s8 + $0x4c] sm:$0xf] %v4310_v56  ;;  %v4314_v52 = vcombine.low %v6729_v61, %v6729_v61 }
 0x239   : > { %v3376_v6 = vadd.f32 %v5088_v58, %v3375_v62  ;;  %v3593_v7 = vor.u32 %v3591_v57, %v3590_v22  ;;  %v6821_v43 = vsel %vm6651_vm8, %v3590_v22, 0  ;;  %4359 = vst [vmem:[%s6626_s8 + $0x50] sm:$0x1] %v4311_v36  ;;  %v4315_v9 = vcombine.low %v6725_v46, %v6725_v46  ;;  %4360 = vst [vmem:[%s6626_s8 + $0x54] sm:$0xf] %v4312_v50 }
 0x23a   : > { %v3586_v11 = vor.u32 %v3584_v0, %v3583_v8  ;;  %v6817_v17 = vsel %vm6651_vm8, %v3583_v8, 0  ;;  %v3445_v1 = vadd.f32 %v3444_v10, %v3414_v13  ;;  %4361 = vst [vmem:[%s6626_s8 + $0x58] sm:$0xf] %v4313_v24  ;;  %v4316_v47 = vcombine.high %v6725_v46, %v6725_v46  ;;  %4362 = vst [vmem:[%s6626_s8 + $0x5c] sm:$0x1] %v4314_v52 }
 0x23b   : > { %v3377_v20 = vrot.slane %v3376_v6, 4  ;;  %v6836_v32 = vsel %vm6651_vm8, 0, %v3593_v7  ;;  %v4317_v61 = vcombine.low %v6733_v18, %v6733_v18  ;;  %v4318_v54 = vcombine.low %v6751_v30, %v6751_v30  ;;  %4363 = vst [vmem:[%s6626_s8 + $0x60] sm:$0xf] %v4315_v9 }
 0x23c   : > { %v3643_v5 = vsel %vm6651_vm8, 0, %v3586_v11  ;;  %v3446_v12 = vrot.slane %v3445_v1, 4  ;;  %v4319_v34 = vcombine.high %v6751_v30, %v6751_v30  ;;  %v4320_v27 = vcombine.low %v6747_v60, %v6747_v60  ;;  %4364 = vst [vmem:[%s6626_s8 + $0x64] sm:$0xf] %v4316_v47 }
 0x23d   : > { %v3378_v15 = vadd.f32 %v3377_v20, %v3376_v6  ;;  %v4321_v46 = vcombine.low %v6743_v16, %v6743_v16  ;;  %v4322_v18 = vcombine.high %v6743_v16, %v6743_v16  ;;  %v4323_v37 = vcombine.low %v6755_v51, %v6755_v51  ;;  %4365 = vst [vmem:[%s6626_s8 + $0x68] sm:$0x1] %v4317_v61 }
 0x23e   : > { %v3447_v60 = vadd.f32 %v3446_v12, %v3445_v1  ;;  %v4324_v26 = vcombine.low %v6765_v14, %v6765_v14  ;;  %v4325_v16 = vcombine.high %v6765_v14, %v6765_v14  ;;  %4366 = vst [vmem:[%s6626_s8 + $0x6c] sm:$0xf] %v4318_v54  ;;  %4367 = vst [vmem:[%s6626_s8 + $0x70] sm:$0xf] %v4319_v34 }
 0x23f   : > { %v3379_v30 = vrot.slane %v3378_v15, 2  ;;  %v4326_v51 = vcombine.low %v6773_v40, %v6773_v40  ;;  %v4327_v31 = vcombine.low %v6769_v63, %v6769_v63  ;;  %v4328_v44 = vcombine.high %v6769_v63, %v6769_v63  ;;  %4368 = vst [vmem:[%s6626_s8 + $0x74] sm:$0x1] %v4320_v27  ;;  %4369 = vst [vmem:[%s6626_s8 + $0x78] sm:$0xf] %v4321_v46 }
 0x240   : > { %v4329_v19 = vcombine.low %v6777_v39, %v6777_v39  ;;  %4370 = vst [vmem:[%s6626_s8 + $0x7c] sm:$0xf] %v4322_v18  ;;  %4371 = vst [vmem:[%s6626_s8 + $0x80] sm:$0x1] %v4323_v37  ;;  %v3448_v35 = vrot.slane %v3447_v60, 2  ;;  %v4330_v40 = vcombine.low %v6795_v42, %v6795_v42  ;;  %v4331_v63 = vcombine.high %v6795_v42, %v6795_v42 }
 0x241   : > { %v3380_v14 = vadd.f32 %v3379_v30, %v3378_v15  ;;  %4372 = vst [vmem:[%s6626_s8 + $0x84] sm:$0xf] %v4324_v26  ;;  %4373 = vst [vmem:[%s6626_s8 + $0x88] sm:$0xf] %v4325_v16  ;;  %v4332_v39 = vcombine.low %v6791_v48, %v6791_v48  ;;  %v4333_v21 = vcombine.low %v6787_v29, %v6787_v29 }
 0x242   : > { %v4334_v58 = vcombine.high %v6787_v29, %v6787_v29  ;;  %v4335_v55 = vcombine.low %v6799_v53, %v6799_v53  ;;  %4374 = vst [vmem:[%s6626_s8 + $0x8c] sm:$0x1] %v4326_v51  ;;  %4375 = vst [vmem:[%s6626_s8 + $0x90] sm:$0xf] %v4327_v31  ;;  %v3449_v23 = vadd.f32 %v3448_v35, %v3447_v60 }
 0x243   : > { %4376 = vst [vmem:[%s6626_s8 + $0x94] sm:$0xf] %v4328_v44  ;;  %4377 = vst [vmem:[%s6626_s8 + $0x98] sm:$0x1] %v4329_v19  ;;  %v3381_v2 = vrot.slane %v3380_v14, 1  ;;  %v4336_v48 = vcombine.low %v3643_v5, %v3643_v5  ;;  %v4337_v13 = vcombine.high %v3643_v5, %v3643_v5  ;;  %v4338_v29 = vcombine.low %v6817_v17, %v6817_v17 }
 0x244   : > { %4378 = vst [vmem:[%s6626_s8 + $0x9c] sm:$0xf] %v4330_v40  ;;  %4379 = vst [vmem:[%s6626_s8 + $0xa0] sm:$0xf] %v4331_v63  ;;  %v4339_v4 = vcombine.low %v6836_v32, %v6836_v32  ;;  %v4340_v28 = vcombine.high %v6836_v32, %v6836_v32  ;;  %v4341_v38 = vcombine.low %v6821_v43, %v6821_v43  ;;  %v3450_v33 = vrot.slane %v3449_v23, 1 }
 0x245   : > { %4380 = vst [vmem:[%s6626_s8 + $0xa4] sm:$0x1] %v4332_v39  ;;  %4381 = vst [vmem:[%s6626_s8 + $0xa8] sm:$0xf] %v4333_v21  ;;  %v3382_v45 = vadd.f32 %v3381_v2, %v3380_v14 }
 0x246   : > { %4382 = vst [vmem:[%s6626_s8 + $0xac] sm:$0xf] %v4334_v58  ;;  %4383 = vst [vmem:[%s6626_s8 + $0xb0] sm:$0x1] %v4335_v55  ;;  %v3451_v42 = vadd.f32 %v3450_v33, %v3449_v23 }
 0x247   : > { %4384 = vst [vmem:[%s6626_s8 + $0xb4] sm:$0xf] %v4336_v48  ;;  %4385 = vst [vmem:[%s6626_s8 + $0xb8] sm:$0xf] %v4337_v13 }
 0x248   : > { %4386 = vst [vmem:[%s6626_s8 + $0xbc] sm:$0x1] %v4338_v29  ;;  %4387 = vst [vmem:[%s6626_s8 + $0xc0] sm:$0xf] %v4339_v4  ;;  %v3453_v53 = vsel %vm3452_vm6, %v3382_v45, %v3451_v42 }
 0x249   : > { %4388 = vst [vmem:[%s6626_s8 + $0xc4] sm:$0xf] %v4340_v28  ;;  %4389 = vst [vmem:[%s6626_s8 + $0xc8] sm:$0x1] %v4341_v38 }
 0x24a   : > { %3454 = vst [vmem:[%s185_s10] sm:$0x3] %v3453_v53 }
 0x24b   : > { %5491 = shalt.err (!%p5488_p5)
}
 0x24c   : > { %s5492_s30 = scalar_lea.hbm %s6923_s21, 32  ;;  %s5496_s7 = scalar_lea.hbm %s6976_s3, 64 }
 0x24d   : > { %p5493_p6 = scmp.ne.s32.totalorder %s6923_s21, %s5492_s30  ;;  %p5497_p10 = scmp.lt.u32.totalorder %s6923_s21, %s6976_s3 }
 0x24e   : > { %p5498_p11 = scmp.lt.u32.totalorder %s5496_s7, %s5492_s30  ;;  %p5500_p13 = scmp.lt.u32.totalorder %s5492_s30, %s6923_s21 }
 0x24f   : > { %p5494_p7 = pnand %p5493_p6, %p5620_p4 }
 0x250   : > { %p5499_p12 = por %p5498_p11, %p5497_p10 }
 0x251   : > { %p5495_p9 = pneg %p5494_p7 }
 0x252   : > { %p5501_p0 = por %p5500_p13, %p5499_p12 }
 0x254   : > { %p5502_p1 = pnand %p5501_p0, %p5495_p9 }
 0x256   : > { %5505 = shalt.err (!%p5502_p1)
}
 0x257   : > { %5315 = dma.vmem_to_hbm [thread:$0]  (%p5620_p4), %s6925_s18, 32, %s6923_s21, %s3895_s15  }
 0x258 PF: > { %p5321_p2 = scmp.ge.s32.totalorder %s5556_s17, 2  ;;  %s3932_s26 = sand.u32 1, %s5536_s12  }
 0x259   : > { %s3933_s9 = scalar_lea.sflag [#allocation3], %s3932_s26 }
 0x25a   : > { %p5318_p3 = pnand %p5321_p2, %p5627_p8 }
 0x25c   : > { %5531 = dma.done.wait (!%p5318_p3), %s3933_s9, 32  }
 0x25d   : > { %5533 = vsyncadd (!%p5318_p3), %s3933_s9, 4294967264  ;;  %s17_s17 = sadd.s32 1, %s5556_s17   ;;  %s7024_s12 = smov %s5540_s13 }
 0x25e   : > { %p14_p5 = scmp.ge.s32.totalorder %s17_s17, 4   ;;  %s7025_s13 = smov %s5544_s14 }
 0x25f   : > { %s7026_s14 = smov %s5633_s25  ;;  %s7027_s15 = smov %s5552_s16 }
 0x260   : > { %s7028_s16 = smov %s7030_s20  ;;  %16 = sbr.rel (!%p14_p5) target bundleno = 4 (0x4), region = 90 }
 0x267   :  { %3938 = vsyncpa [#allocation3], 1 }
 0x268   :  { %3940 = vsyncpa [#allocation3 + $0x1], 1 }

</bundles_post_ra>
